<compile_context>
chip_gen: v6e
topology: v6e:2x2x1
jax: 0.10.0
libtpu: 0.0.40
codegen_flags: <defaults>
</compile_context>

<pallas_src>
import math
import jax
import jax.numpy as jnp
from jax.experimental import pallas as pl
from jax.experimental.pallas import tpu as pltpu

LANE = 128  # lane width; nfeat is zero-padded to a multiple of this


# ---------------------------------------------------------------------------
# Fused kernel: fc+relu -> gcn-residual-relu -> gcn-residual-relu (one graph)
# ---------------------------------------------------------------------------
def fused_graph_gcn_kernel(x_ref, adj_ref,
                           fcw_ref, fcb_ref,
                           w1_ref, b1_ref,
                           w2_ref, b2_ref,
                           o_ref,
                           h_ref):
    """Blocks (per grid step = one graph):

    x:[1,N,Fp] bf16   adj:[1,N,N] bf16
    fcw:[Fp,H] bf16   fcb:[1,H] f32
    w1,w2:[H,H] bf16  b1,b2:[1,H] f32
    o:[1,N,H] f32     h (scratch, reused for x1 then x2): [N,H] bf16
    """
    f32, bf16 = jnp.float32, jnp.bfloat16

    x = x_ref[0]        # [N, Fp] bf16
    adj = adj_ref[0]    # [N, N]  bf16

    # ---- layer 0: x1 = relu(x @ Wfc + bfc) ---------------------------------
    y0 = jnp.dot(x, fcw_ref[...], preferred_element_type=f32)
    h_ref[...] = jnp.maximum(y0 + fcb_ref[...], 0.0).astype(bf16)

    # ---- layer 1: x2 = relu(adj @ (x1 @ W1) + b1 + x1) ---------------------
    s1 = jnp.dot(h_ref[...], w1_ref[...], preferred_element_type=f32).astype(bf16)
    a1 = jnp.dot(adj, s1, preferred_element_type=f32)
    # bias + residual + relu epilogue in f32 (VPU filler under MXU drain)
    x2 = jnp.maximum(a1 + b1_ref[...] + h_ref[...].astype(f32), 0.0)
    h_ref[...] = x2.astype(bf16)

    # ---- layer 2: x3 = relu(adj @ (x2 @ W2) + b2 + x2) ---------------------
    s2 = jnp.dot(h_ref[...], w2_ref[...], preferred_element_type=f32).astype(bf16)
    a2 = jnp.dot(adj, s2, preferred_element_type=f32)
    x3 = jnp.maximum(a2 + b2_ref[...] + h_ref[...].astype(f32), 0.0)
    o_ref[0] = x3.astype(o_ref.dtype)


# ---------------------------------------------------------------------------
# Wrapper: one pallas_call, grid over graphs (parallel -> megacore on v7x),
# weights/biases resident across the whole grid (constant index_map).
# ---------------------------------------------------------------------------
def graph_gcn_forward(params, x, adj):
    B, N, Fp = x.shape
    H = params["fc_w"].shape[1]
    assert params["fc_w"].shape[0] == Fp, "x must be padded to fc_w's row count"

    per_graph = lambda shape: pl.BlockSpec(shape, lambda b: (b, 0, 0))
    resident = lambda shape: pl.BlockSpec(shape, lambda b: (0, 0))

    return pl.pallas_call(
        fused_graph_gcn_kernel,
        out_shape=jax.ShapeDtypeStruct((B, N, H), jnp.float32),
        grid=(B,),
        in_specs=[
            per_graph((1, N, Fp)),   # x      (bf16, per graph)
            per_graph((1, N, N)),    # adj    (bf16, per graph)
            resident((Fp, H)),       # fc_w   (bf16, resident)
            resident((1, H)),        # fc_b   (f32,  resident)
            resident((H, H)),        # w1     (bf16, resident)
            resident((1, H)),        # b1     (f32,  resident)
            resident((H, H)),        # w2     (bf16, resident)
            resident((1, H)),        # b2     (f32,  resident)
        ],
        out_specs=per_graph((1, N, H)),
        scratch_shapes=[pltpu.VMEM((N, H), jnp.bfloat16)],  # reused x1 / x2 buffer
        compiler_params=pltpu.CompilerParams(
            dimension_semantics=("parallel",),               # v7x: 2 TCs share graphs
            vmem_limit_bytes=32 * 1024 * 1024,
        ),
    )(x, adj,
      params["fc_w"], params["fc_b"],
      params["w1"], params["b1"],
      params["w2"], params["b2"])


# ---------------------------------------------------------------------------
# Parameter init (PyTorch-equivalent shapes; fc_w rows zero-padded to LANE,
# matmul weights stored in bf16, biases kept f32 as (1, H)).
# ---------------------------------------------------------------------------
def init_params(key, nfeat, nhid1=256):
    k_fc_w, k_fc_b, k_w1, k_b1, k_w2, k_b2 = jax.random.split(key, 6)

    # nn.Linear(nfeat, nhid1): weight [nhid1, nfeat] -> stored transposed [nfeat, nhid1]
    bound_fc = 1.0 / math.sqrt(nfeat)
    fc_w = jax.random.uniform(k_fc_w, (nfeat, nhid1), jnp.float32,
                              minval=-bound_fc, maxval=bound_fc)
    fc_b = jax.random.uniform(k_fc_b, (1, nhid1), jnp.float32,
                              minval=-bound_fc, maxval=bound_fc)

    # GraphConvolution(nhid1, nhid1): weight [in, out], bias [out], stdv = 1/sqrt(out)
    stdv = 1.0 / math.sqrt(nhid1)
    w1 = jax.random.uniform(k_w1, (nhid1, nhid1), jnp.float32, minval=-stdv, maxval=stdv)
    b1 = jax.random.uniform(k_b1, (1, nhid1), jnp.float32, minval=-stdv, maxval=stdv)
    w2 = jax.random.uniform(k_w2, (nhid1, nhid1), jnp.float32, minval=-stdv, maxval=stdv)
    b2 = jax.random.uniform(k_b2, (1, nhid1), jnp.float32, minval=-stdv, maxval=stdv)

    # Zero-pad fc_w rows so the layer-0 contraction dim is lane-dense (128).
    nfeat_pad = ((nfeat + LANE - 1) // LANE) * LANE
    fc_w_pad = jnp.zeros((nfeat_pad, nhid1), jnp.float32).at[:nfeat, :].set(fc_w)

    return dict(fc_w=fc_w_pad.astype(jnp.bfloat16), fc_b=fc_b,
                w1=w1.astype(jnp.bfloat16), b1=b1,
                w2=w2.astype(jnp.bfloat16), b2=b2)


# ---------------------------------------------------------------------------
# Main
# ---------------------------------------------------------------------------
if __name__ == "__main__":
    B = 2         # graphs per batch (parallel grid axis)
    N = 128       # number of graph nodes
    NFEAT = 32    # input feature dim (padded to 128 for lane density)
    NHID1 = 256   # hidden dim (module default)

    key = jax.random.PRNGKey(0)
    k_x, k_adj, k_params = jax.random.split(key, 3)

    x = jax.random.normal(k_x, (B, N, NFEAT), jnp.float32)

    # Deterministic normalized adjacency per graph (dense; spmm == mm semantically).
    a = (jax.random.uniform(k_adj, (B, N, N)) < 0.1).astype(jnp.float32)
    a = jnp.maximum(a, jnp.swapaxes(a, -1, -2)) + jnp.eye(N, dtype=jnp.float32)[None]
    adj = a / jnp.sum(a, axis=-1, keepdims=True)          # row-normalized

    params = init_params(k_params, NFEAT, NHID1)
    Fp = params["fc_w"].shape[0]

    # Pad x feature dim with zeros to match the padded fc_w; cast MXU operands to bf16.
    x_pad = jnp.pad(x, ((0, 0), (0, 0), (0, Fp - NFEAT)))
    x_bf = x_pad.astype(jnp.bfloat16)
    adj_bf = adj.astype(jnp.bfloat16)

    out = graph_gcn_forward(params, x_bf, adj_bf)
    jax.block_until_ready(out)

    # Pure-JAX reference mirroring the kernel's bf16 rounding of activations/support
    # (f32 accumulation everywhere, so only rounding + summation-order differences).
    f32, bf16 = jnp.float32, jnp.bfloat16
    xf, adjf = x_bf.astype(f32), adj_bf.astype(f32)
    fcw = params["fc_w"].astype(f32)
    w1f, w2f = params["w1"].astype(f32), params["w2"].astype(f32)
    fcb, b1, b2 = params["fc_b"], params["b1"], params["b2"]

    x1 = jnp.maximum(jnp.einsum("bnf,fh->bnh", xf, fcw) + fcb, 0.0)
    x1 = x1.astype(bf16).astype(f32)
    s1 = jnp.einsum("bnh,hk->bnk", x1, w1f).astype(bf16).astype(f32)
    x2 = jnp.maximum(jnp.einsum("bnm,bmh->bnh", adjf, s1) + b1 + x1, 0.0)
    x2 = x2.astype(bf16).astype(f32)
    s2 = jnp.einsum("bnh,hk->bnk", x2, w2f).astype(bf16).astype(f32)
    x3 = jnp.maximum(jnp.einsum("bnm,bmh->bnh", adjf, s2) + b2 + x2, 0.0)

    assert out.shape == (B, N, NHID1)
    assert jnp.allclose(out, x3, atol=1e-2, rtol=1e-2), \
        float(jnp.max(jnp.abs(out - x3)))

    print("KERNEL_OK")
</pallas_src>

<mosaic_0001>
module attributes {stable_mosaic.version = 11 : i64} {
  func.func @fused_graph_gcn_kernel(%arg0: i32, %arg1: memref<1x128x128xbf16, #tpu.memory_space<vmem>>, %arg2: memref<1x128x128xbf16, #tpu.memory_space<vmem>>, %arg3: memref<128x256xbf16, #tpu.memory_space<vmem>>, %arg4: memref<1x256xf32, #tpu.memory_space<vmem>>, %arg5: memref<256x256xbf16, #tpu.memory_space<vmem>>, %arg6: memref<1x256xf32, #tpu.memory_space<vmem>>, %arg7: memref<256x256xbf16, #tpu.memory_space<vmem>>, %arg8: memref<1x256xf32, #tpu.memory_space<vmem>>, %arg9: memref<1x128x256xf32, #tpu.memory_space<vmem>>, %arg10: memref<128x256xbf16, #tpu.memory_space<vmem>>) attributes {dimension_semantics = [#tpu.dimension_semantics<parallel>], iteration_bounds = array<i64: 2>, scalar_prefetch = 0 : i64, scratch_operands = 1 : i64, tpu.core_type = #tpu.core_type<tc>, window_params = [{transform_indices = @transform_0, window_bounds = array<i64: 1, 128, 128>}, {transform_indices = @transform_1, window_bounds = array<i64: 1, 128, 128>}, {pipeline_mode = #tpu.pipeline_mode<synchronous>, transform_indices = @transform_2, window_bounds = array<i64: 128, 256>}, {pipeline_mode = #tpu.pipeline_mode<synchronous>, transform_indices = @transform_3, window_bounds = array<i64: 1, 256>}, {pipeline_mode = #tpu.pipeline_mode<synchronous>, transform_indices = @transform_4, window_bounds = array<i64: 256, 256>}, {pipeline_mode = #tpu.pipeline_mode<synchronous>, transform_indices = @transform_5, window_bounds = array<i64: 1, 256>}, {pipeline_mode = #tpu.pipeline_mode<synchronous>, transform_indices = @transform_6, window_bounds = array<i64: 256, 256>}, {pipeline_mode = #tpu.pipeline_mode<synchronous>, transform_indices = @transform_7, window_bounds = array<i64: 1, 256>}, {transform_indices = @transform_8, window_bounds = array<i64: 1, 128, 256>}]} {
    %c0 = arith.constant 0 : index
    %c0_0 = arith.constant 0 : index
    %c0_1 = arith.constant 0 : index
    %0 = vector.load %arg1[%c0, %c0_0, %c0_1] : memref<1x128x128xbf16, #tpu.memory_space<vmem>>, vector<1x128x128xbf16>
    %1 = vector.shape_cast %0 : vector<1x128x128xbf16> to vector<128x128xbf16>
    %c0_2 = arith.constant 0 : index
    %c0_3 = arith.constant 0 : index
    %c0_4 = arith.constant 0 : index
    %2 = vector.load %arg2[%c0_2, %c0_3, %c0_4] : memref<1x128x128xbf16, #tpu.memory_space<vmem>>, vector<1x128x128xbf16>
    %3 = vector.shape_cast %2 : vector<1x128x128xbf16> to vector<128x128xbf16>
    %c0_5 = arith.constant 0 : index
    %c0_6 = arith.constant 0 : index
    %4 = vector.load %arg3[%c0_5, %c0_6] : memref<128x256xbf16, #tpu.memory_space<vmem>>, vector<128x256xbf16>
    %cst = arith.constant dense<0.000000e+00> : vector<128x256xf32>
    %5 = tpu.matmul %1, %4, %cst {dimension_numbers = #tpu.dot_dimension_numbers<[1], [0], [0], [1], [0, 0, 1, 1], [], []>} : vector<128x128xbf16>, vector<128x256xbf16>, vector<128x256xf32> -> vector<128x256xf32>
    %c0_7 = arith.constant 0 : index
    %c0_8 = arith.constant 0 : index
    %6 = vector.load %arg4[%c0_7, %c0_8] : memref<1x256xf32, #tpu.memory_space<vmem>>, vector<1x256xf32>
    %7 = vector.broadcast %6 : vector<1x256xf32> to vector<128x256xf32>
    %8 = arith.addf %5, %7 : vector<128x256xf32>
    %cst_9 = arith.constant 0.000000e+00 : f32
    %9 = vector.broadcast %cst_9 : f32 to vector<128x256xf32>
    %10 = arith.maximumf %8, %9 : vector<128x256xf32>
    %11 = arith.truncf %10 : vector<128x256xf32> to vector<128x256xbf16>
    %c0_10 = arith.constant 0 : index
    %c0_11 = arith.constant 0 : index
    %12 = vector.load %arg10[%c0_10, %c0_11] : memref<128x256xbf16, #tpu.memory_space<vmem>>, vector<128x256xbf16>
    tpu.vector_store %arg10[%c0_10, %c0_11], %11 {strides = array<i32>} : memref<128x256xbf16, #tpu.memory_space<vmem>>, vector<128x256xbf16>,
    %c0_12 = arith.constant 0 : index
    %c0_13 = arith.constant 0 : index
    %13 = vector.load %arg10[%c0_12, %c0_13] : memref<128x256xbf16, #tpu.memory_space<vmem>>, vector<128x256xbf16>
    %c0_14 = arith.constant 0 : index
    %c0_15 = arith.constant 0 : index
    %14 = vector.load %arg5[%c0_14, %c0_15] : memref<256x256xbf16, #tpu.memory_space<vmem>>, vector<256x256xbf16>
    %cst_16 = arith.constant dense<0.000000e+00> : vector<128x256xf32>
    %15 = tpu.matmul %13, %14, %cst_16 {dimension_numbers = #tpu.dot_dimension_numbers<[1], [0], [0], [1], [0, 0, 1, 1], [], []>} : vector<128x256xbf16>, vector<256x256xbf16>, vector<128x256xf32> -> vector<128x256xf32>
    %16 = arith.truncf %15 : vector<128x256xf32> to vector<128x256xbf16>
    %cst_17 = arith.constant dense<0.000000e+00> : vector<128x256xf32>
    %17 = tpu.matmul %3, %16, %cst_17 {dimension_numbers = #tpu.dot_dimension_numbers<[1], [0], [0], [1], [0, 0, 1, 1], [], []>} : vector<128x128xbf16>, vector<128x256xbf16>, vector<128x256xf32> -> vector<128x256xf32>
    %c0_18 = arith.constant 0 : index
    %c0_19 = arith.constant 0 : index
    %18 = vector.load %arg6[%c0_18, %c0_19] : memref<1x256xf32, #tpu.memory_space<vmem>>, vector<1x256xf32>
    %19 = vector.broadcast %18 : vector<1x256xf32> to vector<128x256xf32>
    %20 = arith.addf %17, %19 : vector<128x256xf32>
    %c0_20 = arith.constant 0 : index
    %c0_21 = arith.constant 0 : index
    %21 = vector.load %arg10[%c0_20, %c0_21] : memref<128x256xbf16, #tpu.memory_space<vmem>>, vector<128x256xbf16>
    %22 = arith.extf %21 : vector<128x256xbf16> to vector<128x256xf32>
    %23 = arith.addf %20, %22 : vector<128x256xf32>
    %cst_22 = arith.constant 0.000000e+00 : f32
    %24 = vector.broadcast %cst_22 : f32 to vector<128x256xf32>
    %25 = arith.maximumf %23, %24 : vector<128x256xf32>
    %26 = arith.truncf %25 : vector<128x256xf32> to vector<128x256xbf16>
    %c0_23 = arith.constant 0 : index
    %c0_24 = arith.constant 0 : index
    %27 = vector.load %arg10[%c0_23, %c0_24] : memref<128x256xbf16, #tpu.memory_space<vmem>>, vector<128x256xbf16>
    tpu.vector_store %arg10[%c0_23, %c0_24], %26 {strides = array<i32>} : memref<128x256xbf16, #tpu.memory_space<vmem>>, vector<128x256xbf16>,
    %c0_25 = arith.constant 0 : index
    %c0_26 = arith.constant 0 : index
    %28 = vector.load %arg10[%c0_25, %c0_26] : memref<128x256xbf16, #tpu.memory_space<vmem>>, vector<128x256xbf16>
    %c0_27 = arith.constant 0 : index
    %c0_28 = arith.constant 0 : index
    %29 = vector.load %arg7[%c0_27, %c0_28] : memref<256x256xbf16, #tpu.memory_space<vmem>>, vector<256x256xbf16>
    %cst_29 = arith.constant dense<0.000000e+00> : vector<128x256xf32>
    %30 = tpu.matmul %28, %29, %cst_29 {dimension_numbers = #tpu.dot_dimension_numbers<[1], [0], [0], [1], [0, 0, 1, 1], [], []>} : vector<128x256xbf16>, vector<256x256xbf16>, vector<128x256xf32> -> vector<128x256xf32>
    %31 = arith.truncf %30 : vector<128x256xf32> to vector<128x256xbf16>
    %cst_30 = arith.constant dense<0.000000e+00> : vector<128x256xf32>
    %32 = tpu.matmul %3, %31, %cst_30 {dimension_numbers = #tpu.dot_dimension_numbers<[1], [0], [0], [1], [0, 0, 1, 1], [], []>} : vector<128x128xbf16>, vector<128x256xbf16>, vector<128x256xf32> -> vector<128x256xf32>
    %c0_31 = arith.constant 0 : index
    %c0_32 = arith.constant 0 : index
    %33 = vector.load %arg8[%c0_31, %c0_32] : memref<1x256xf32, #tpu.memory_space<vmem>>, vector<1x256xf32>
    %34 = vector.broadcast %33 : vector<1x256xf32> to vector<128x256xf32>
    %35 = arith.addf %32, %34 : vector<128x256xf32>
    %c0_33 = arith.constant 0 : index
    %c0_34 = arith.constant 0 : index
    %36 = vector.load %arg10[%c0_33, %c0_34] : memref<128x256xbf16, #tpu.memory_space<vmem>>, vector<128x256xbf16>
    %37 = arith.extf %36 : vector<128x256xbf16> to vector<128x256xf32>
    %38 = arith.addf %35, %37 : vector<128x256xf32>
    %cst_35 = arith.constant 0.000000e+00 : f32
    %39 = vector.broadcast %cst_35 : f32 to vector<128x256xf32>
    %40 = arith.maximumf %38, %39 : vector<128x256xf32>
    %c0_36 = arith.constant 0 : index
    %c0_37 = arith.constant 0 : index
    %c0_38 = arith.constant 0 : index
    %41 = vector.load %arg9[%c0_36, %c0_37, %c0_38] : memref<1x128x256xf32, #tpu.memory_space<vmem>>, vector<1x128x256xf32>
    %42 = vector.shape_cast %41 : vector<1x128x256xf32> to vector<128x256xf32>
    %43 = vector.shape_cast %40 : vector<128x256xf32> to vector<1x128x256xf32>
    tpu.vector_store %arg9[%c0_36, %c0_37, %c0_38], %43 {strides = array<i32>} : memref<1x128x256xf32, #tpu.memory_space<vmem>>, vector<1x128x256xf32>,
    return
  }
  func.func @transform_0(%arg0: i32) -> (i32, i32, i32) {
    %c0_i32 = arith.constant 0 : i32
    %c0_i32_0 = arith.constant 0 : i32
    %c0_i32_1 = arith.constant 0 : i32
    return %arg0, %c0_i32, %c0_i32_0 : i32, i32, i32
  }
  func.func @transform_1(%arg0: i32) -> (i32, i32, i32) {
    %c0_i32 = arith.constant 0 : i32
    %c0_i32_0 = arith.constant 0 : i32
    %c0_i32_1 = arith.constant 0 : i32
    return %arg0, %c0_i32, %c0_i32_0 : i32, i32, i32
  }
  func.func @transform_2(%arg0: i32) -> (i32, i32) {
    %c0_i32 = arith.constant 0 : i32
    %c0_i32_0 = arith.constant 0 : i32
    %c0_i32_1 = arith.constant 0 : i32
    return %c0_i32, %c0_i32_0 : i32, i32
  }
  func.func @transform_3(%arg0: i32) -> (i32, i32) {
    %c0_i32 = arith.constant 0 : i32
    %c0_i32_0 = arith.constant 0 : i32
    %c0_i32_1 = arith.constant 0 : i32
    return %c0_i32, %c0_i32_0 : i32, i32
  }
  func.func @transform_4(%arg0: i32) -> (i32, i32) {
    %c0_i32 = arith.constant 0 : i32
    %c0_i32_0 = arith.constant 0 : i32
    %c0_i32_1 = arith.constant 0 : i32
    return %c0_i32, %c0_i32_0 : i32, i32
  }
  func.func @transform_5(%arg0: i32) -> (i32, i32) {
    %c0_i32 = arith.constant 0 : i32
    %c0_i32_0 = arith.constant 0 : i32
    %c0_i32_1 = arith.constant 0 : i32
    return %c0_i32, %c0_i32_0 : i32, i32
  }
  func.func @transform_6(%arg0: i32) -> (i32, i32) {
    %c0_i32 = arith.constant 0 : i32
    %c0_i32_0 = arith.constant 0 : i32
    %c0_i32_1 = arith.constant 0 : i32
    return %c0_i32, %c0_i32_0 : i32, i32
  }
  func.func @transform_7(%arg0: i32) -> (i32, i32) {
    %c0_i32 = arith.constant 0 : i32
    %c0_i32_0 = arith.constant 0 : i32
    %c0_i32_1 = arith.constant 0 : i32
    return %c0_i32, %c0_i32_0 : i32, i32
  }
  func.func @transform_8(%arg0: i32) -> (i32, i32, i32) {
    %c0_i32 = arith.constant 0 : i32
    %c0_i32_0 = arith.constant 0 : i32
    %c0_i32_1 = arith.constant 0 : i32
    return %arg0, %c0_i32, %c0_i32_0 : i32, i32, i32
  }
}

</mosaic_0001>

<bundles_post_ra>
// kernel: tpu_custom_call.1
= control target key start
LH: loop header
LB: loop body
LE: loop exit
PB: predicated region body
PF: predicated region fallthrough
CT: control target
= control target key end

     0   :  { %s3924_s0 = inlined_call_operand.hbm [shape: bf16[2,128,128], index: 0, kind: input, shape index: {}]   ;;  %s3925_s1 = inlined_call_operand.hbm [shape: bf16[2,128,128], index: 1, kind: input, shape index: {}]   ;;  %s3926_s2 = inlined_call_operand.hbm [shape: bf16[128,256], index: 2, kind: input, shape index: {}]   ;;  %s3927_s3 = inlined_call_operand.vmem [shape: f32[1,256], index: 3, kind: input, shape index: {}]   ;;  %s3928_s4 = inlined_call_operand.hbm [shape: bf16[256,256], index: 4, kind: input, shape index: {}]   ;;  %s3929_s5 = inlined_call_operand.vmem [shape: f32[1,256], index: 5, kind: input, shape index: {}]   ;;  %s3930_s6 = inlined_call_operand.hbm [shape: bf16[256,256], index: 6, kind: input, shape index: {}]   ;;  %s3931_s7 = inlined_call_operand.vmem [shape: f32[1,256], index: 7, kind: input, shape index: {}]   ;;  %s3932_s8 = inlined_call_operand.hbm [shape: f32[2,128,256], index: 8, kind: output, shape index: {}]  }
   0x1   :  { %3939 = sst [smem:[#allocation19_spill]] %s3924_s0 }
   0x2   :  { %3940 = sst [smem:[#allocation20_spill]] %s3926_s2 }
   0x3   :  { %3941 = sst [smem:[#allocation21_spill]] %s3928_s4 }
   0x4   :  { %3942 = sst [smem:[#allocation22_spill]] %s3930_s6 }
   0x5   :  { %13 = vsyncpa [#allocation4], 0 }
   0x6   :  { %15 = vsyncpa [#allocation4 + $0x1], 0 }
   0x7   :  { %16 = vsyncpa [#allocation7], 0 }
   0x8   :  { %18 = vsyncpa [#allocation7 + $0x1], 0 }
   0x9   :  { %19 = vsyncpa [#allocation10], 0 }
   0xa   :  { %20 = vsyncpa [#allocation5], 0 }
   0xb   :  { %22 = vsyncpa [#allocation5 + $0x1], 0  ;;  %s3221_s27 = smov 0   ;;  %s3223_s28 = smov 0  }
   0xc   :  { %s3225_s29 = smov 0   ;;  %s3227_s30 = smov 0  }
   0xd LB: > { %s3242_s9 = sadd.s32 4294967295, %s3161_s30   ;;  %s2459_s10 = sadd.s32 4294967294, %s3161_s30   ;;  %s3161_s30 = sphi %s3227_s30, %s3971_s30   ;;  %s3157_s29 = sphi %s3225_s29, %s3970_s29   ;;  %s3153_s28 = sphi %s3223_s28, %s3969_s28   ;;  %s3149_s27 = sphi %s3221_s27, %s3968_s27  }
   0xe   : > { %p48_p0 = scmp.ne.s32.totalorder %s3153_s28, %s3149_s27  ;;  %p3933_p1 = scmp.eq.s32.totalorder %s3242_s9, 0 }
   0xf   : > { %p230_p3 = scmp.eq.s32.totalorder %s2459_s10, 1  ;;  %p2460_p5 = scmp.ge.s32.totalorder %s3161_s30, 1 }
  0x10   : > { %p3251_p4 = por %p3933_p1, %p48_p0  ;;  %p237_p7 = scmp.lt.s32.totalorder %s3161_s30, 3 }
  0x11   : > { %p3256_p6 = por %p230_p3, %p48_p0  ;;  %s3163_s14 = smov [#allocation8]  }
  0x12   : > { %s3943_s11 = scalar_select %p3251_p4, 1, 0 }
  0x13   : > { %s3944_s12 = scalar_select %p3256_p6, 1, 0 }
  0x14   : > { %p3261_p8 = pnand %p2460_p5, %p237_p7  ;;  %s249_s15 = sshll.u32 %s3163_s14, 4  ;;  %s250_s15 = int_to_ptr.vmem [resolvable:$true] %s249_s15 }
  0x15   : > { %s3164_s17 = smov [#allocation9]   ;;  %s3165_s19 = smov [#allocation11]  }
  0x16   : > { %p2744_p9 = pneg %p3261_p8  ;;  %s265_s18 = sshll.u32 %s3164_s17, 4  ;;  %s266_s18 = int_to_ptr.vmem [resolvable:$true] %s265_s18 }
  0x17   : > { %s281_s20 = sshll.u32 %s3165_s19, 4  ;;  %s2962_s21 = scalar_lea.vmem %s250_s15, 2048  ;;  %s282_s20 = int_to_ptr.vmem [resolvable:$true] %s281_s20 }
  0x18   : > { %p3270_p11 = pnand %p2744_p9, %p3933_p1  ;;  %p2963_p13 = scmp.ne.s32.totalorder %s250_s15, %s2962_s21 }
  0x19   : > { %p2970_p5 = scmp.lt.s32.totalorder %s250_s15, %s250_s15  ;;  %p2971_p7 = scmp.lt.s32.totalorder %s2962_s21, %s2962_s21 }
  0x1a   : > { %p2953_p12 = pneg %p3270_p11 }
  0x1b   : > { %p2972_p9 = por %p2971_p7, %p2970_p5 }
  0x1c   : > { %p2965_p0 = pnand %p2963_p13, %p2953_p12 }
  0x1e   : > { %p2966_p3 = pneg %p2965_p0 }
  0x20   : > { %p2973_p10 = pnand %p2972_p9, %p2966_p3 }
  0x22   : > { %2976 = shalt.err (!%p2973_p10)
}
  0x23   : > { %s3166_s22 = smov 128   ;;  %s3167_s23 = smov 8  }
  0x24   : > { %s3947_s2 = sld [smem:[#allocation20_spill]]  ;;  %s2988_s26 = scalar_lea.vmem %s266_s18, 4096 }
  0x25   : > { %p2989_p1 = scmp.ne.s32.totalorder %s266_s18, %s2988_s26  ;;  %p2996_p2 = scmp.lt.s32.totalorder %s266_s18, %s266_s18 }
  0x26   : > { %p2997_p6 = scmp.lt.s32.totalorder %s2988_s26, %s2988_s26 }
  0x27   : > { %p2991_p13 = pnand %p2989_p1, %p2953_p12 }
  0x28   : > { %p2998_p5 = por %p2997_p6, %p2996_p2 }
  0x29   : > { %p2992_p0 = pneg %p2991_p13 }
  0x2a   : > { %2747 = dma.hbm_to_vmem [thread:$0]  (!%p3270_p11), %s3947_s2, 2048, %s250_s15, [#allocation7], %s3166_s22, %s3166_s22, %s3167_s23  }
  0x2b   : > { %p2999_p3 = pnand %p2998_p5, %p2992_p0 }
  0x2d   : > { %3002 = shalt.err (!%p2999_p3)
}
  0x2e   : > { %s3948_s4 = sld [smem:[#allocation21_spill]]  ;;  %s3014_s15 = scalar_lea.vmem %s282_s20, 4096 }
  0x2f   : > { %p3015_p10 = scmp.ne.s32.totalorder %s282_s20, %s3014_s15  ;;  %p3022_p9 = scmp.lt.s32.totalorder %s282_s20, %s282_s20 }
  0x30   : > { %p3023_p13 = scmp.lt.s32.totalorder %s3014_s15, %s3014_s15 }
  0x31   : > { %p3017_p7 = pnand %p3015_p10, %p2953_p12 }
  0x32   : > { %p3024_p4 = por %p3023_p13, %p3022_p9 }
  0x33   : > { %p3018_p1 = pneg %p3017_p7 }
  0x34   : > { %2750 = dma.hbm_to_vmem [thread:$0]  (!%p3270_p11), %s3948_s4, 4096, %s266_s18, [#allocation10], %s3166_s22, %s3166_s22, %s3167_s23  }
  0x35   : > { %p3025_p2 = pnand %p3024_p4, %p3018_p1 }
  0x37   : > { %3028 = shalt.err (!%p3025_p2)
}
  0x38   : > { %s3949_s6 = sld [smem:[#allocation22_spill]]  ;;  %s3301_s18 = sadd.s32 1, %s3161_s30  }
  0x39   : > { %s32_s16 = ssub.s32 %s3161_s30, %s3301_s18  ;;  %s35_s21 = sadd.s32 1, %s3157_s29 }
  0x3a   : > { %p33_p4 = scmp.eq.s32.totalorder %s32_s16, 0  ;;  %p42_p6 = scmp.ne.s32.totalorder %s3157_s29, %s3153_s28 }
  0x3b   : > { %p43_p12 = scmp.eq.s32.totalorder %s3161_s30, 0  ;;  %p2768_p0 = scmp.lt.s32.totalorder %s3161_s30, 2 }
  0x3c   : > { %s3311_s24 = scalar_select %p33_p4, %s3157_s29, %s35_s21  }
  0x3d   : > { %p44_p5 = por %p43_p12, %p42_p6  ;;  %p3951_p3 = scmp.eq.s32.totalorder %s3242_s9, 1 }
  0x3e   : > { %2753 = dma.hbm_to_vmem [thread:$0]  (!%p3270_p11), %s3949_s6, 4096, %s282_s20, [#allocation10], %s3166_s22, %s3166_s22, %s3167_s23  }
  0x3f   : > { %3950 = sst [smem:[#allocation18_spill]] %s3311_s24  ;;  %p3315_p10 = por %p3951_p3, %p42_p6 }
  0x40   : > { %s298_s26 = sand.u32 1, %s3157_s29   ;;  %s3935_s10 = sshll.u32 %s3161_s30, 10 }
  0x41   : > { %s3952_s25 = scalar_select %p3315_p10, 1, 0 }
  0x42   : > { %s3321_s20 = sshll.u32 %s298_s26, 6  ;;  %s3953_s0 = sld [smem:[#allocation19_spill]] }
  0x43   : > { %s302_s15 = scalar_lea.vmem [#allocation3], %s3321_s20  ;;  %p3331_p11 = pnand %p2768_p0, %p44_p5 }
  0x44   : > { %s309_s17 = sshll.u32 %s302_s15, 4  ;;  %s3337_s16 = scalar_lea.sflag [#allocation4], %s298_s26  ;;  %s3335_s17 = int_to_ptr.vmem [resolvable:$true] %s309_s17 }
  0x45   : > { %p3031_p1 = pneg %p3331_p11 }
  0x48   : > { %s3328_s14 = scalar_lea.hbm %s3953_s0, %s3935_s10  ;;  %s3034_s15 = scalar_lea.hbm %s3953_s0, 2048 }
  0x49   : > { %s3029_s21 = scalar_lea.hbm %s3328_s14, 1024  ;;  %p3035_p2 = scmp.lt.s32.totalorder %s3328_s14, %s3953_s0 }
  0x4a   : > { %p3030_p7 = scmp.ne.s32.totalorder %s3328_s14, %s3029_s21  ;;  %p3036_p4 = scmp.lt.s32.totalorder %s3034_s15, %s3029_s21 }
  0x4c   : > { %p3032_p9 = pnand %p3031_p1, %p3030_p7  ;;  %p3037_p6 = por %p3036_p4, %p3035_p2 }
  0x4e   : > { %p3033_p13 = pneg %p3032_p9 }
  0x50   : > { %p3038_p12 = pnand %p3037_p6, %p3033_p13 }
  0x52   : > { %3041 = shalt.err (!%p3038_p12)
}
  0x53   : > { %s3042_s26 = scalar_lea.vmem %s3335_s17, 1024  ;;  %s3168_s22 = smov [#allocation3]  }
  0x54   : > { %p3043_p0 = scmp.ne.s32.totalorder %s3335_s17, %s3042_s26  ;;  %s3047_s23 = sshll.u32 %s3168_s22, 4  ;;  %s3048_s23 = int_to_ptr.vmem [resolvable:$false] %s3047_s23 }
  0x55   : > { %s3049_s4 = scalar_lea.vmem %s3048_s23, 2048  ;;  %p3050_p7 = scmp.lt.s32.totalorder %s3335_s17, %s3048_s23 }
  0x56   : > { %p3045_p5 = pnand %p3043_p0, %p3031_p1  ;;  %p3051_p9 = scmp.lt.s32.totalorder %s3049_s4, %s3042_s26 }
  0x58   : > { %p3046_p3 = pneg %p3045_p5  ;;  %p3052_p10 = por %p3051_p9, %p3050_p7 }
  0x5a   : > { %p3053_p2 = pnand %p3052_p10, %p3046_p3 }
  0x5c   : > { %3056 = shalt.err (!%p3053_p2)
}
  0x5d   : > { %s3169_s2 = smov 64   ;;  %s3170_s10 = smov 4  }
  0x5e   : > { %2757 = dma.hbm_to_vmem [thread:$0]  (!%p3331_p11), %s3328_s14, 1024, %s3335_s17, %s3337_s16, %s3169_s2, %s3169_s2, %s3170_s10  }
  0x5f   : > { %s3955_s21 = sshll.u32 %s3161_s30, 10  ;;  %s323_s22 = scalar_lea.vmem [#allocation6], %s3321_s20 }
  0x60   : > { %s3372_s26 = scalar_lea.hbm %s3925_s1, %s3955_s21  ;;  %s330_s23 = sshll.u32 %s323_s22, 4  ;;  %s3376_s23 = int_to_ptr.vmem [resolvable:$true] %s330_s23 }
  0x61   : > { %s319_s0 = sand.u32 1, %s3161_s30   ;;  %s3057_s24 = scalar_lea.hbm %s3372_s26, 1024 }
  0x62   : > { %s320_s6 = scalar_lea.sflag [#allocation7], %s319_s0  ;;  %p3058_p10 = scmp.ne.s32.totalorder %s3372_s26, %s3057_s24 }
  0x63   : > { %s3062_s16 = scalar_lea.hbm %s3925_s1, 2048  ;;  %p3063_p6 = scmp.lt.s32.totalorder %s3372_s26, %s3925_s1 }
  0x64   : > { %p3060_p13 = pnand %p3058_p10, %p3031_p1  ;;  %p3064_p12 = scmp.lt.s32.totalorder %s3062_s16, %s3057_s24 }
  0x66   : > { %p3061_p4 = pneg %p3060_p13  ;;  %p3065_p0 = por %p3064_p12, %p3063_p6 }
  0x68   : > { %p3066_p5 = pnand %p3065_p0, %p3061_p4 }
  0x6a   : > { %3069 = shalt.err (!%p3066_p5)
}
  0x6b   : > { %s3070_s0 = scalar_lea.vmem %s3376_s23, 1024  ;;  %s3171_s20 = smov [#allocation6]  }
  0x6c   : > { %p3071_p3 = scmp.ne.s32.totalorder %s3376_s23, %s3070_s0  ;;  %s3075_s15 = sshll.u32 %s3171_s20, 4  ;;  %s3076_s15 = int_to_ptr.vmem [resolvable:$false] %s3075_s15 }
  0x6d   : > { %s3077_s22 = scalar_lea.vmem %s3076_s15, 2048  ;;  %p3078_p2 = scmp.lt.s32.totalorder %s3376_s23, %s3076_s15 }
  0x6e   : > { %p3073_p7 = pnand %p3071_p3, %p3031_p1  ;;  %p3079_p10 = scmp.lt.s32.totalorder %s3077_s22, %s3070_s0 }
  0x70   : > { %p3074_p9 = pneg %p3073_p7  ;;  %p3080_p13 = por %p3079_p10, %p3078_p2 }
  0x72   : > { %p3081_p6 = pnand %p3080_p13, %p3074_p9 }
  0x74   : > { %3084 = shalt.err (!%p3081_p6)
}
  0x75   : > { %2760 = dma.hbm_to_vmem [thread:$0]  (!%p3331_p11), %s3372_s26, 1024, %s3376_s23, %s320_s6, %s3169_s2, %s3169_s2, %s3170_s10  }
  0x76   : > { %342 = sbr.rel (%p3261_p8) target bundleno = 1417 (0x589), region = 52  ;;  %s3406_s24 = sand.u32 (!%p3261_p8), 1, %s3153_s28  }
  0x77   : > { %s2472_s14 = sshll.u32 (!%p3261_p8), %s3406_s24, 6  ;;  %s345_s17 = scalar_lea.sflag (!%p3261_p8), [#allocation4], %s3406_s24 }
  0x78   : > { %s3410_s16 = scalar_lea.vmem (!%p3261_p8), [#allocation3], %s2472_s14  ;;  %p3956_p1 = scmp.ne.s32.totalorder (!%p3261_p8), %s3943_s11, 0 }
  0x7b   : > { %3128 = dma.done.wait (%p3956_p1), %s345_s17, 1024  }
  0x7c   : > { %3130 = vsyncadd (%p3956_p1), %s345_s17, 4294966272  ;;  %s353_s6 = sand.u32 1, %s3242_s9   ;;  %s3417_s19 = scalar_lea.vmem [#allocation6], %s2472_s14 }
  0x7d   : > { %s354_s13 = scalar_lea.sflag [#allocation7], %s353_s6 }
  0x7e   : > { %3132 = dma.done.wait (%p3956_p1), %s354_s13, 1024  }
  0x7f   : > { %3134 = vsyncadd (%p3956_p1), %s354_s13, 4294966272  ;;  %p3957_p8 = scmp.eq.s32.totalorder %s3242_s9, 0 }
  0x81   : > { %3136 = dma.done.wait (%p3957_p8), [#allocation7], 2048   ;;  %p3958_p11 = pmov %p3957_p8 }
  0x82   : > { %p3959_p4 = pmov %p3957_p8 }
  0x83   : > { %3138 = vsyncadd (%p3958_p11), [#allocation7], 4294965248 }
  0x84   : > { %3140 = dma.done.wait (%p3959_p4), [#allocation10], 8192   ;;  %p3960_p12 = pmov %p3959_p4 }
  0x85   : > { %v3937_v0 = vmov 0   ;;  %v2815_v1 = vld [vmem:[#allocation8 + $0x74] ss:$8 sps:$4 sm:$0xff]   ;;  %v2817_v2 = vld [vmem:[#allocation8 + $0x70] ss:$8 sps:$4 sm:$0xff]   ;;  %v2839_v24 = vld [vmem:[%s3410_s16] sm:$0xff]   ;;  %v458_v57 = vlaneseq }
  0x86   : > { %3142 = vsyncadd (%p3960_p12), [#allocation10], 4294959104  ;;  %628 = vmatprep.mubr.bf16.mxu0 %v3937_v0  ;;  %596 = vmatprep.subr.bf16.mxu0 %v2815_v1  ;;  %v2818_v3 = vld [vmem:[#allocation8 + $0x64] ss:$8 sps:$4 sm:$0xff]   ;;  %v2820_v4 = vld [vmem:[#allocation8 + $0x60] ss:$8 sps:$4 sm:$0xff]  }
  0x87   : > { %597 = vmatpush1.bf16.msra.mxu0 %v2817_v2  ;;  %v2821_v5 = vld [vmem:[#allocation8 + $0x54] ss:$8 sps:$4 sm:$0xff]   ;;  %v2823_v6 = vld [vmem:[#allocation8 + $0x50] ss:$8 sps:$4 sm:$0xff]   ;;  %v2824_v7 = vld [vmem:[#allocation8 + $0x44] ss:$8 sps:$4 sm:$0xff]  }
  0x88   : > { %598 = vmatprep.subr.bf16.mxu0 %v2818_v3  ;;  %v2826_v8 = vld [vmem:[#allocation8 + $0x40] ss:$8 sps:$4 sm:$0xff]   ;;  %v2827_v9 = vld [vmem:[#allocation8 + $0x34] ss:$8 sps:$4 sm:$0xff]   ;;  %v2829_v10 = vld [vmem:[#allocation8 + $0x30] ss:$8 sps:$4 sm:$0xff]  }
  0x89   : > { %v2830_v11 = vld [vmem:[#allocation8 + $0x24] ss:$8 sps:$4 sm:$0xff]   ;;  %v2832_v12 = vld [vmem:[#allocation8 + $0x20] ss:$8 sps:$4 sm:$0xff]   ;;  %v2833_v13 = vld [vmem:[#allocation8 + $0x14] ss:$8 sps:$4 sm:$0xff]  }
  0x8a   : > { %v2847_v14 = vld [vmem:[#allocation9 + $0x74] ss:$8 sps:$4 sm:$0xff]   ;;  %v2849_v15 = vld [vmem:[#allocation9 + $0x70] ss:$8 sps:$4 sm:$0xff]   ;;  %v2850_v16 = vld [vmem:[#allocation9 + $0x64] ss:$8 sps:$4 sm:$0xff]  }
  0x8b   : > { %599 = vmatpush1.bf16.msra.mxu0 %v2820_v4  ;;  %1141 = vmatprep.subr.bf16.mxu1 %v2847_v14  ;;  %v2852_v17 = vld [vmem:[#allocation9 + $0x60] ss:$8 sps:$4 sm:$0xff]   ;;  %v2835_v18 = vld [vmem:[#allocation8 + $0x10] ss:$8 sps:$4 sm:$0xff]   ;;  %v2853_v19 = vld [vmem:[#allocation9 + $0x54] ss:$8 sps:$4 sm:$0xff]  }
  0x8c   : > { %600 = vmatprep.subr.bf16.mxu0 %v2821_v5  ;;  %1142 = vmatpush1.bf16.msra.mxu1 %v2849_v15  ;;  %v2836_v20 = vld [vmem:[#allocation8 + $0x4] ss:$8 sps:$4 sm:$0xff]   ;;  %v2855_v21 = vld [vmem:[#allocation9 + $0x50] ss:$8 sps:$4 sm:$0xff]   ;;  %v2838_v22 = vld [vmem:[#allocation8] ss:$8 sps:$4 sm:$0xff]  }
  0x8d   : > { %1143 = vmatprep.subr.bf16.mxu1 %v2850_v16  ;;  %v2856_v23 = vld [vmem:[#allocation9 + $0x44] ss:$8 sps:$4 sm:$0xff]   ;;  %v2858_v25 = vld [vmem:[#allocation9 + $0x40] ss:$8 sps:$4 sm:$0xff]   ;;  %v2859_v26 = vld [vmem:[#allocation9 + $0x34] ss:$8 sps:$4 sm:$0xff]  }
  0x8e   : > { %v2861_v27 = vld [vmem:[#allocation9 + $0x30] ss:$8 sps:$4 sm:$0xff]   ;;  %v2862_v28 = vld [vmem:[#allocation9 + $0x24] ss:$8 sps:$4 sm:$0xff]   ;;  %v2864_v30 = vld [vmem:[#allocation9 + $0x20] ss:$8 sps:$4 sm:$0xff]  }
  0x8f   : > { %601 = vmatpush1.bf16.msra.mxu0 %v2823_v6  ;;  %v2840_v29 = vld [vmem:[%s3410_s16 + $0x8] sm:$0xff]   ;;  %v2865_v31 = vld [vmem:[#allocation9 + $0x14] ss:$8 sps:$4 sm:$0xff]   ;;  %v2867_v32 = vld [vmem:[#allocation9 + $0x10] ss:$8 sps:$4 sm:$0xff]   ;;  %v459_v58 = vshrl.u32 %v458_v57, 7 }
  0x90   : > { %602 = vmatprep.subr.bf16.mxu0 %v2824_v7  ;;  %1144 = vmatpush1.bf16.msra.mxu1 %v2852_v17  ;;  %v2868_v33 = vld [vmem:[#allocation9 + $0x4] ss:$8 sps:$4 sm:$0xff]   ;;  %v2841_v34 = vld [vmem:[%s3410_s16 + $0x10] sm:$0xff]   ;;  %v2870_v35 = vld [vmem:[#allocation9] ss:$8 sps:$4 sm:$0xff]   ;;  %s2477_s4 = sshll.u32 %s3406_s24, 8 }
  0x91   : > { %1145 = vmatprep.subr.bf16.mxu1 %v2853_v19  ;;  %v2871_v36 = vld [vmem:[#allocation9 + $0xf4] ss:$8 sps:$4 sm:$0xff]   ;;  %v2873_v37 = vld [vmem:[#allocation9 + $0xf0] ss:$8 sps:$4 sm:$0xff]   ;;  %v2874_v38 = vld [vmem:[#allocation9 + $0xe4] ss:$8 sps:$4 sm:$0xff]  }
  0x92   : > { %v2842_v39 = vld [vmem:[%s3410_s16 + $0x18] sm:$0xff]   ;;  %v2876_v40 = vld [vmem:[#allocation9 + $0xe0] ss:$8 sps:$4 sm:$0xff]   ;;  %v2880_v43 = vld [vmem:[#allocation9 + $0xc4] ss:$8 sps:$4 sm:$0xff]   ;;  %v3448_v59 = vsub.s32 0, %v459_v58 }
  0x93   : > { %603 = vmatpush1.bf16.msra.mxu0 %v2826_v8  ;;  %v2877_v41 = vld [vmem:[#allocation9 + $0xd4] ss:$8 sps:$4 sm:$0xff]   ;;  %v2879_v42 = vld [vmem:[#allocation9 + $0xd0] ss:$8 sps:$4 sm:$0xff]   ;;  %v2843_v44 = vld [vmem:[%s3410_s16 + $0x20] sm:$0xff]   ;;  %v3453_v61 = vsub.s32 1, %v459_v58 }
  0x94   : > { %604 = vmatprep.subr.bf16.mxu0 %v2827_v9  ;;  %1146 = vmatpush1.bf16.msra.mxu1 %v2855_v21  ;;  %v2882_v45 = vld [vmem:[#allocation9 + $0xc0] ss:$8 sps:$4 sm:$0xff]   ;;  %v2883_v46 = vld [vmem:[#allocation9 + $0xb4] ss:$8 sps:$4 sm:$0xff]   ;;  %v2885_v47 = vld [vmem:[#allocation9 + $0xb0] ss:$8 sps:$4 sm:$0xff]  }
  0x95   : > { %1147 = vmatprep.subr.bf16.mxu1 %v2856_v23  ;;  %v2844_v48 = vld [vmem:[%s3410_s16 + $0x28] sm:$0xff]   ;;  %v2845_v49 = vld [vmem:[%s3410_s16 + $0x30] sm:$0xff]   ;;  %v2846_v50 = vld [vmem:[%s3410_s16 + $0x38] sm:$0xff]   ;;  %s3790_s0 = scalar_lea.vmem [#allocation12], %s2477_s4  ;;  %s2677_s20 = sshll.u32 %s3242_s9, 12 }
  0x96   : > { %v2886_v51 = vld [vmem:[#allocation9 + $0xa4] ss:$8 sps:$4 sm:$0xff]   ;;  %v2888_v52 = vld [vmem:[#allocation9 + $0xa0] ss:$8 sps:$4 sm:$0xff]   ;;  %v2889_v53 = vld [vmem:[#allocation9 + $0x94] ss:$8 sps:$4 sm:$0xff]   ;;  %s3877_s17 = scalar_lea.hbm %s3932_s8, %s2677_s20 }
  0x97   : > { %605 = vmatpush1.bf16.msra.mxu0 %v2829_v10  ;;  %v2891_v54 = vld [vmem:[#allocation9 + $0x90] ss:$8 sps:$4 sm:$0xff]   ;;  %v2892_v55 = vld [vmem:[#allocation9 + $0x84] ss:$8 sps:$4 sm:$0xff]   ;;  %v2894_v56 = vld [vmem:[#allocation9 + $0x80] ss:$8 sps:$4 sm:$0xff]  }
  0x98   : > { %606 = vmatprep.subr.bf16.mxu0 %v2830_v11  ;;  %1148 = vmatpush1.bf16.msra.mxu1 %v2858_v25  ;;  %v456_v60 = vld [vmem:[%s3927_s3] sm:$0x3]  ;;  %s2335_s15 = sshll.u32 %s3790_s0, 4  ;;  %s2322_s16 = scalar_lea.sflag [#allocation5], %s3406_s24  ;;  %s3879_s15 = int_to_ptr.vmem [resolvable:$true] %s2335_s15 }
  0x99   : > { %1149 = vmatprep.subr.bf16.mxu1 %v2859_v26  ;;  %v3456_v62 = vrot.slane %v456_v60, %v3448_v59  ;;  %v3459_v63 = vrot.slane %v456_v60, %v3453_v61  ;;  %s3085_s6 = scalar_lea.vmem %s3879_s15, 4096  ;;  %p3964_p5 = scmp.ne.s32.totalorder %s3952_s25, 0 }
  0x9a   : > { %p3086_p0 = scmp.ne.s32.totalorder %s3879_s15, %s3085_s6  ;;  %s3173_s9 = smov [#allocation12]  }
  0x9b   : > { %607 = vmatpush1.bf16.msra.mxu0 %v2832_v12  ;;  %s3089_s13 = sshll.u32 %s3173_s9, 4  ;;  %s3090_s13 = int_to_ptr.vmem [resolvable:$false] %s3089_s13 }
  0x9c   : > { %608 = vmatprep.subr.bf16.mxu0 %v2833_v13  ;;  %1150 = vmatpush1.bf16.msra.mxu1 %v2861_v27  ;;  %p3087_p3 = pnand %p3086_p0, %p3964_p5  ;;  %p3092_p9 = scmp.lt.s32.totalorder %s3879_s15, %s3090_s13 }
  0x9d   : > { %1151 = vmatprep.subr.bf16.mxu1 %v2862_v28 }
  0x9e   : > { %p3088_p7 = pneg %p3087_p3 }
  0x9f   : > { %609 = vmatpush1.bf16.msra.mxu0 %v2835_v18 }
  0xa0   : > { %610 = vmatprep.subr.bf16.mxu0 %v2836_v20  ;;  %1152 = vmatpush1.bf16.msra.mxu1 %v2864_v30 }
  0xa1   : > { %1153 = vmatprep.subr.bf16.mxu1 %v2865_v31 }
  0xa3   : > { %611 = vmatpush1.bf16.msra.mxu0 %v2838_v22 }
  0xa4   : > { %1154 = vmatpush1.bf16.msra.mxu1 %v2867_v32 }
  0xa5   : > { %1155 = vmatprep.subr.bf16.mxu1 %v2868_v33 }
  0xa6   : > { %629 = vmatmul.mubr.bf16.vlgmr.msra.gmra.mxu0 %v2839_v24 }
  0xa7   : > { %638 = vmatprep.mubr.bf16.mxu0 %v3937_v0 }
  0xa8   : > { %1156 = vmatpush1.bf16.msra.mxu1 %v2870_v35 }
  0xa9   : > { %1157 = vmatprep.subr.bf16.mxu1 %v2871_v36 }
  0xac   : > { %1158 = vmatpush2.bf16.msra.mxu1 %v2873_v37 }
  0xad   : > { %1159 = vmatprep.subr.bf16.mxu1 %v2874_v38 }
  0xae   : > { %639 = vmatmul.mubr.bf16.gmra.mxu0 %v2840_v29 }
  0xaf   : > { %648 = vmatprep.mubr.bf16.mxu0 %v3937_v0 }
  0xb0   : > { %1160 = vmatpush2.bf16.msra.mxu1 %v2876_v40 }
  0xb1   : > { %1161 = vmatprep.subr.bf16.mxu1 %v2877_v41 }
  0xb4   : > { %1162 = vmatpush2.bf16.msra.mxu1 %v2879_v42 }
  0xb5   : > { %1163 = vmatprep.subr.bf16.mxu1 %v2880_v43 }
  0xb6   : > { %649 = vmatmul.mubr.bf16.gmra.mxu0 %v2841_v34 }
  0xb7   : > { %658 = vmatprep.mubr.bf16.mxu0 %v3937_v0 }
  0xb8   : > { %1164 = vmatpush2.bf16.msra.mxu1 %v2882_v45 }
  0xb9   : > { %1165 = vmatprep.subr.bf16.mxu1 %v2883_v46 }
  0xbc   : > { %1166 = vmatpush2.bf16.msra.mxu1 %v2885_v47 }
  0xbd   : > { %1167 = vmatprep.subr.bf16.mxu1 %v2886_v51 }
  0xbe   : > { %659 = vmatmul.mubr.bf16.gmra.mxu0 %v2842_v39 }
  0xbf   : > { %668 = vmatprep.mubr.bf16.mxu0 %v3937_v0 }
  0xc0   : > { %1168 = vmatpush2.bf16.msra.mxu1 %v2888_v52 }
  0xc1   : > { %1169 = vmatprep.subr.bf16.mxu1 %v2889_v53 }
  0xc4   : > { %1170 = vmatpush2.bf16.msra.mxu1 %v2891_v54 }
  0xc5   : > { %1171 = vmatprep.subr.bf16.mxu1 %v2892_v55 }
  0xc6   : > { %669 = vmatmul.mubr.bf16.gmra.mxu0 %v2843_v44 }
  0xc7   : > { %678 = vmatprep.mubr.bf16.mxu0 %v3937_v0 }
  0xc8   : > { %1172 = vmatpush2.bf16.msra.mxu1 %v2894_v56 }
  0xce   : > { %679 = vmatmul.mubr.bf16.gmra.mxu0 %v2844_v48 }
  0xcf   : > { %688 = vmatprep.mubr.bf16.mxu0 %v3937_v0 }
  0xd6   : > { %689 = vmatmul.mubr.bf16.gmra.mxu0 %v2845_v49 }
  0xd7   : > { %698 = vmatprep.mubr.bf16.mxu0 %v3937_v0 }
  0xde   : > { %699 = vmatmul.mubr.bf16.gmra.mxu0 %v2846_v50 }
  0xdf   : > { %1362 = vmatprep.mubr.bf16.mxu0 %v3937_v0 }
 0x166   : > { %v630_v1 = vpop.f32.mrf.mxu0 }
 0x167   : > { %v631_v2 = vadd.f32 %v630_v1, %v3456_v62 }
 0x168   : > { %v632_v3 = vpop.f32.mrf.mxu0 }
 0x169   : > { %v633_v4 = vadd.f32 %v632_v3, %v3459_v63  ;;  %v709_v6 = vmax.f32 %v631_v2, 0.0 }
 0x16a   : > { %v634_v5 = vpop.f32.mrf.mxu0 }
 0x16b   : > { %v710_v7 = vmax.f32 %v633_v4, 0.0  ;;  %v635_v8 = vadd.f32 %v634_v5, %v3456_v62 }
 0x16c   : > { %v636_v9 = vpop.f32.mrf.mxu0 }
 0x16d   : > { %v3464_v10 = vpack.c.bf16 %v710_v7, %v709_v6  ;;  %v637_v11 = vadd.f32 %v636_v9, %v3459_v63  ;;  %v711_v12 = vmax.f32 %v635_v8, 0.0 }
 0x16e   : > { %v640_v13 = vpop.f32.mrf.mxu0 }
 0x16f   : > { %v712_v14 = vmax.f32 %v637_v11, 0.0  ;;  %v641_v15 = vadd.f32 %v640_v13, %v3456_v62  ;;  %v2678_v20 = vpack.c.bf16 %v711_v12, %v709_v6 }
 0x170   : > { %v642_v16 = vpop.f32.mrf.mxu0 }
 0x171   : > { %v3468_v17 = vpack.c.bf16 %v712_v14, %v711_v12  ;;  %v643_v18 = vadd.f32 %v642_v16, %v3459_v63  ;;  %v2679_v19 = vpack.c.bf16 %v712_v14, %v710_v7  ;;  %v713_v22 = vmax.f32 %v641_v15, 0.0 }
 0x172   : > { %v644_v21 = vpop.f32.mrf.mxu0 }
 0x173   : > { %v714_v23 = vmax.f32 %v643_v18, 0.0  ;;  %v645_v24 = vadd.f32 %v644_v21, %v3456_v62  ;;  %1173 = vmatprep.mubr.bf16.mxu1 %v2679_v19 }
 0x174   : > { %v646_v25 = vpop.f32.mrf.mxu0  ;;  %1174 = vmatmul.mubr.bf16.vlgmr.msra.gmra.mxu1 %v2678_v20 }
 0x175   : > { %v3472_v26 = vpack.c.bf16 %v714_v23, %v713_v22  ;;  %v647_v27 = vadd.f32 %v646_v25, %v3459_v63  ;;  %v715_v28 = vmax.f32 %v645_v24, 0.0 }
 0x176   : > { %v650_v29 = vpop.f32.mrf.mxu0 }
 0x177   : > { %v716_v30 = vmax.f32 %v647_v27, 0.0  ;;  %v651_v31 = vadd.f32 %v650_v29, %v3456_v62  ;;  %v2680_v36 = vpack.c.bf16 %v715_v28, %v713_v22 }
 0x178   : > { %v652_v32 = vpop.f32.mrf.mxu0 }
 0x179   : > { %v3476_v33 = vpack.c.bf16 %v716_v30, %v715_v28  ;;  %v2681_v34 = vpack.c.bf16 %v716_v30, %v714_v23  ;;  %v653_v35 = vadd.f32 %v652_v32, %v3459_v63  ;;  %v717_v38 = vmax.f32 %v651_v31, 0.0 }
 0x17a   : > { %v654_v37 = vpop.f32.mrf.mxu0 }
 0x17b   : > { %v718_v39 = vmax.f32 %v653_v35, 0.0  ;;  %v655_v40 = vadd.f32 %v654_v37, %v3456_v62  ;;  %1183 = vmatprep.mubr.bf16.mxu1 %v2681_v34 }
 0x17c   : > { %v656_v41 = vpop.f32.mrf.mxu0  ;;  %1184 = vmatmul.mubr.bf16.gmra.mxu1 %v2680_v36 }
 0x17d   : > { %v3480_v42 = vpack.c.bf16 %v718_v39, %v717_v38  ;;  %v657_v43 = vadd.f32 %v656_v41, %v3459_v63  ;;  %v719_v44 = vmax.f32 %v655_v40, 0.0 }
 0x17e   : > { %v660_v45 = vpop.f32.mrf.mxu0 }
 0x17f   : > { %v720_v46 = vmax.f32 %v657_v43, 0.0  ;;  %v661_v47 = vadd.f32 %v660_v45, %v3456_v62  ;;  %v2682_v52 = vpack.c.bf16 %v719_v44, %v717_v38 }
 0x180   : > { %v662_v48 = vpop.f32.mrf.mxu0 }
 0x181   : > { %v3484_v49 = vpack.c.bf16 %v720_v46, %v719_v44  ;;  %v2683_v50 = vpack.c.bf16 %v720_v46, %v718_v39  ;;  %v663_v51 = vadd.f32 %v662_v48, %v3459_v63  ;;  %v721_v54 = vmax.f32 %v661_v47, 0.0 }
 0x182   : > { %v664_v53 = vpop.f32.mrf.mxu0 }
 0x183   : > { %v722_v55 = vmax.f32 %v663_v51, 0.0  ;;  %v665_v56 = vadd.f32 %v664_v53, %v3456_v62  ;;  %1193 = vmatprep.mubr.bf16.mxu1 %v2683_v50 }
 0x184   : > { %v666_v57 = vpop.f32.mrf.mxu0  ;;  %1194 = vmatmul.mubr.bf16.gmra.mxu1 %v2682_v52 }
 0x185   : > { %v3488_v58 = vpack.c.bf16 %v722_v55, %v721_v54  ;;  %v667_v60 = vadd.f32 %v666_v57, %v3459_v63  ;;  %v723_v1 = vmax.f32 %v665_v56, 0.0 }
 0x186   : > { %v670_v2 = vpop.f32.mrf.mxu0 }
 0x187   : > { %v724_v3 = vmax.f32 %v667_v60, 0.0  ;;  %v671_v4 = vadd.f32 %v670_v2, %v3456_v62  ;;  %v2684_v9 = vpack.c.bf16 %v723_v1, %v721_v54 }
 0x188   : > { %v672_v5 = vpop.f32.mrf.mxu0 }
 0x189   : > { %v3492_v6 = vpack.c.bf16 %v724_v3, %v723_v1  ;;  %v2685_v7 = vpack.c.bf16 %v724_v3, %v722_v55  ;;  %v673_v8 = vadd.f32 %v672_v5, %v3459_v63  ;;  %v725_v12 = vmax.f32 %v671_v4, 0.0 }
 0x18a   : > { %v674_v11 = vpop.f32.mrf.mxu0 }
 0x18b   : > { %v726_v13 = vmax.f32 %v673_v8, 0.0  ;;  %v675_v14 = vadd.f32 %v674_v11, %v3456_v62  ;;  %1203 = vmatprep.mubr.bf16.mxu1 %v2685_v7 }
 0x18c   : > { %v676_v15 = vpop.f32.mrf.mxu0  ;;  %1204 = vmatmul.mubr.bf16.gmra.mxu1 %v2684_v9 }
 0x18d   : > { %v3496_v16 = vpack.c.bf16 %v726_v13, %v725_v12  ;;  %v677_v18 = vadd.f32 %v676_v15, %v3459_v63  ;;  %v727_v19 = vmax.f32 %v675_v14, 0.0 }
 0x18e   : > { %v680_v20 = vpop.f32.mrf.mxu0 }
 0x18f   : > { %v728_v21 = vmax.f32 %v677_v18, 0.0  ;;  %v681_v22 = vadd.f32 %v680_v20, %v3456_v62  ;;  %v2686_v28 = vpack.c.bf16 %v727_v19, %v725_v12 }
 0x190   : > { %v682_v23 = vpop.f32.mrf.mxu0 }
 0x191   : > { %v3500_v24 = vpack.c.bf16 %v728_v21, %v727_v19  ;;  %v2687_v25 = vpack.c.bf16 %v728_v21, %v726_v13  ;;  %v683_v27 = vadd.f32 %v682_v23, %v3459_v63  ;;  %v729_v30 = vmax.f32 %v681_v22, 0.0 }
 0x192   : > { %v684_v29 = vpop.f32.mrf.mxu0 }
 0x193   : > { %v730_v31 = vmax.f32 %v683_v27, 0.0  ;;  %v685_v32 = vadd.f32 %v684_v29, %v3456_v62  ;;  %1213 = vmatprep.mubr.bf16.mxu1 %v2687_v25 }
 0x194   : > { %v686_v34 = vpop.f32.mrf.mxu0  ;;  %1214 = vmatmul.mubr.bf16.gmra.mxu1 %v2686_v28 }
 0x195   : > { %v3504_v35 = vpack.c.bf16 %v730_v31, %v729_v30  ;;  %v687_v36 = vadd.f32 %v686_v34, %v3459_v63  ;;  %v731_v37 = vmax.f32 %v685_v32, 0.0 }
 0x196   : > { %v690_v38 = vpop.f32.mrf.mxu0 }
 0x197   : > { %v732_v39 = vmax.f32 %v687_v36, 0.0  ;;  %v691_v40 = vadd.f32 %v690_v38, %v3456_v62  ;;  %v2688_v46 = vpack.c.bf16 %v731_v37, %v729_v30 }
 0x198   : > { %v692_v41 = vpop.f32.mrf.mxu0 }
 0x199   : > { %v3508_v43 = vpack.c.bf16 %v732_v39, %v731_v37  ;;  %v2689_v44 = vpack.c.bf16 %v732_v39, %v730_v31  ;;  %v693_v45 = vadd.f32 %v692_v41, %v3459_v63  ;;  %v733_v48 = vmax.f32 %v691_v40, 0.0  ;;  %v2903_v41 = vld [vmem:[#allocation11 + $0x70] ss:$8 sps:$4 sm:$0xff]  }
 0x19a   : > { %v694_v47 = vpop.f32.mrf.mxu0 }
 0x19b   : > { %v734_v50 = vmax.f32 %v693_v45, 0.0  ;;  %v695_v51 = vadd.f32 %v694_v47, %v3456_v62  ;;  %1223 = vmatprep.mubr.bf16.mxu1 %v2689_v44  ;;  %v2905_v44 = vld [vmem:[#allocation11 + $0x74] ss:$8 sps:$4 sm:$0xff]  }
 0x19c   : > { %v696_v52 = vpop.f32.mrf.mxu0  ;;  %1224 = vmatmul.mubr.bf16.gmra.mxu1 %v2688_v46  ;;  %v2908_v46 = vld [vmem:[#allocation11 + $0x64] ss:$8 sps:$4 sm:$0xff]   ;;  %1939 = vmatprep.subr.bf16.mxu1 %v2905_v44  ;;  %v2924_v44 = vld [vmem:[#allocation11] ss:$8 sps:$4 sm:$0xff]  }
 0x19d   : > { %v3512_v53 = vpack.c.bf16 %v734_v50, %v733_v48  ;;  %v697_v54 = vadd.f32 %v696_v52, %v3459_v63  ;;  %v735_v55 = vmax.f32 %v695_v51, 0.0  ;;  %1940 = vmatpush1.bf16.msra.mxu1 %v2903_v41 }
 0x19e   : > { %v700_v56 = vpop.f32.mrf.mxu0  ;;  %1941 = vmatprep.subr.bf16.mxu1 %v2908_v46  ;;  %v2929_v46 = vld [vmem:[#allocation11 + $0xf4] ss:$8 sps:$4 sm:$0xff]  }
 0x19f   : > { %v736_v57 = vmax.f32 %v697_v54, 0.0  ;;  %v701_v60 = vadd.f32 %v700_v56, %v3456_v62  ;;  %v2690_v5 = vpack.c.bf16 %v735_v55, %v733_v48  ;;  %v2906_v48 = vld [vmem:[#allocation11 + $0x60] ss:$8 sps:$4 sm:$0xff]   ;;  %v2909_v54 = vld [vmem:[#allocation11 + $0x50] ss:$8 sps:$4 sm:$0xff]  }
 0x1a0   : > { %v702_v1 = vpop.f32.mrf.mxu0 }
 0x1a1   : > { %v3516_v2 = vpack.c.bf16 %v736_v57, %v735_v55  ;;  %v2691_v3 = vpack.c.bf16 %v736_v57, %v734_v50  ;;  %v703_v4 = vadd.f32 %v702_v1, %v3459_v63  ;;  %v737_v8 = vmax.f32 %v701_v60, 0.0  ;;  %v2911_v50 = vld [vmem:[#allocation11 + $0x54] ss:$8 sps:$4 sm:$0xff]   ;;  %1942 = vmatpush1.bf16.msra.mxu1 %v2906_v48  ;;  %v2914_v55 = vld [vmem:[#allocation11 + $0x44] ss:$8 sps:$4 sm:$0xff]  }
 0x1a2   : > { %v704_v7 = vpop.f32.mrf.mxu0  ;;  %1943 = vmatprep.subr.bf16.mxu1 %v2911_v50  ;;  %v2912_v60 = vld [vmem:[#allocation11 + $0x40] ss:$8 sps:$4 sm:$0xff]   ;;  %v2917_v1 = vld [vmem:[#allocation11 + $0x34] ss:$8 sps:$4 sm:$0xff]  }
 0x1a3   : > { %v738_v9 = vmax.f32 %v703_v4, 0.0  ;;  %v705_v11 = vadd.f32 %v704_v7, %v3456_v62  ;;  %1233 = vmatprep.mubr.bf16.mxu1 %v2691_v3  ;;  %v2920_v7 = vld [vmem:[#allocation11 + $0x24] ss:$8 sps:$4 sm:$0xff]  }
 0x1a4   : > { %v706_v12 = vpop.f32.mrf.mxu0  ;;  %1234 = vmatmul.mubr.bf16.gmra.mxu1 %v2690_v5  ;;  %v2915_v5 = vld [vmem:[#allocation11 + $0x30] ss:$8 sps:$4 sm:$0xff]  }
 0x1a5   : > { %v3520_v13 = vpack.c.bf16 %v738_v9, %v737_v8  ;;  %v707_v14 = vadd.f32 %v706_v12, %v3459_v63  ;;  %v739_v15 = vmax.f32 %v705_v11, 0.0  ;;  %1944 = vmatpush1.bf16.msra.mxu1 %v2909_v54  ;;  %v2918_v11 = vld [vmem:[#allocation11 + $0x20] ss:$8 sps:$4 sm:$0xff]   ;;  %v2923_v12 = vld [vmem:[#allocation11 + $0x14] ss:$8 sps:$4 sm:$0xff]  }
 0x1a6   : > { %1945 = vmatprep.subr.bf16.mxu1 %v2914_v55  ;;  %v2927_v54 = vld [vmem:[#allocation11 + $0xf0] ss:$8 sps:$4 sm:$0xff]   ;;  %v2932_v55 = vld [vmem:[#allocation11 + $0xe4] ss:$8 sps:$4 sm:$0xff]  }
 0x1a7   : > { %v740_v18 = vmax.f32 %v707_v14, 0.0  ;;  %v2692_v21 = vpack.c.bf16 %v739_v15, %v737_v8 }
 0x1a9   : > { %v3523_v19 = vpack.c.bf16 %v740_v18, %v739_v15  ;;  %v2693_v20 = vpack.c.bf16 %v740_v18, %v738_v9  ;;  %1946 = vmatpush1.bf16.msra.mxu1 %v2912_v60  ;;  %v2921_v18 = vld [vmem:[#allocation11 + $0x10] ss:$8 sps:$4 sm:$0xff]  }
 0x1aa   : > { %1947 = vmatprep.subr.bf16.mxu1 %v2917_v1 }
 0x1ab   : > { %1243 = vmatprep.mubr.bf16.mxu1 %v2693_v20  ;;  %v2926_v20 = vld [vmem:[#allocation11 + $0x4] ss:$8 sps:$4 sm:$0xff]  }
 0x1ac   : > { %1244 = vmatmul.mubr.bf16.gmra.mxu1 %v2692_v21 }
 0x1ad   : > { %1948 = vmatpush1.bf16.msra.mxu1 %v2915_v5  ;;  %v2930_v5 = vld [vmem:[#allocation11 + $0xe0] ss:$8 sps:$4 sm:$0xff]  }
 0x1ae   : > { %1949 = vmatprep.subr.bf16.mxu1 %v2920_v7  ;;  %v2935_v7 = vld [vmem:[#allocation11 + $0xd4] ss:$8 sps:$4 sm:$0xff]  }
 0x1b1   : > { %1950 = vmatpush1.bf16.msra.mxu1 %v2918_v11 }
 0x1b2   : > { %1951 = vmatprep.subr.bf16.mxu1 %v2923_v12 }
 0x1b5   : > { %1952 = vmatpush1.bf16.msra.mxu1 %v2921_v18  ;;  %v2933_v18 = vld [vmem:[#allocation11 + $0xd0] ss:$8 sps:$4 sm:$0xff]  }
 0x1b6   : > { %1953 = vmatprep.subr.bf16.mxu1 %v2926_v20  ;;  %v2938_v20 = vld [vmem:[#allocation11 + $0xc4] ss:$8 sps:$4 sm:$0xff]  }
 0x1b9   : > { %1954 = vmatpush1.bf16.msra.mxu1 %v2924_v44 }
 0x1ba   : > { %1955 = vmatprep.subr.bf16.mxu1 %v2929_v46  ;;  %v2936_v46 = vld [vmem:[#allocation11 + $0xc0] ss:$8 sps:$4 sm:$0xff]  }
 0x1bd   : > { %1956 = vmatpush2.bf16.msra.mxu1 %v2927_v54 }
 0x1be   : > { %1957 = vmatprep.subr.bf16.mxu1 %v2932_v55 }
 0x1c1   : > { %1958 = vmatpush2.bf16.msra.mxu1 %v2930_v5 }
 0x1c2   : > { %1959 = vmatprep.subr.bf16.mxu1 %v2935_v7  ;;  %v1445_v7 = vunpack.c.l.bf16 %v3468_v17 }
 0x1c5   : > { %1960 = vmatpush2.bf16.msra.mxu1 %v2933_v18 }
 0x1c6   : > { %1961 = vmatprep.subr.bf16.mxu1 %v2938_v20 }
 0x1c9   : > { %1962 = vmatpush2.bf16.msra.mxu1 %v2936_v46 }
 0x234   : > { %v3525_v22 = vpop.f32.mrf.mxu1 }
 0x236   : > { %v3527_v23 = vpop.f32.mrf.mxu1 }
 0x238   : > { %v3529_v62 = vpop.f32.mrf.mxu1 }
 0x23a   : > { %v3533_v27 = vpop.f32.mrf.mxu1 }
 0x23c   : > { %v3537_v28 = vpop.f32.mrf.mxu1 }
 0x23e   : > { %v3539_v29 = vpop.f32.mrf.mxu1 }
 0x240   : > { %v3541_v30 = vpop.f32.mrf.mxu1 }
 0x241   : > { %v1256_v31 = vpack.c.bf16 %v3541_v30, %v3537_v28  ;;  %v3625_v28 = vld [vmem:[%s3417_s19 + $0x30] sm:$0xff]   ;;  %v3630_v30 = vld [vmem:[%s3417_s19 + $0x38] sm:$0xff]  }
 0x242   : > { %v3545_v32 = vpop.f32.mrf.mxu1 }
 0x243   : > { %v1257_v34 = vpack.c.bf16 %v3545_v32, %v3539_v29  ;;  %v3963_v29 = vmov 0   ;;  %v3600_v32 = vld [vmem:[%s3417_s19 + $0x8] sm:$0xff]  }
 0x244   : > { %v3549_v36 = vpop.f32.mrf.mxu1 }
 0x246   : > { %v3551_v37 = vpop.f32.mrf.mxu1 }
 0x248   : > { %v3553_v38 = vpop.f32.mrf.mxu1 }
 0x24a   : > { %v3555_v39 = vpop.f32.mrf.mxu1 }
 0x24c   : > { %v3557_v40 = vpop.f32.mrf.mxu1 }
 0x24e   : > { %v3559_v45 = vpop.f32.mrf.mxu1 }
 0x250   : > { %v3561_v47 = vpop.f32.mrf.mxu1 }
 0x252   : > { %v3563_v51 = vpop.f32.mrf.mxu1 }
 0x254   : > { %v3565_v52 = vpop.f32.mrf.mxu1 }
 0x256   : > { %v3567_v56 = vpop.f32.mrf.mxu1 }
 0x258   : > { %v3569_v57 = vpop.f32.mrf.mxu1 }
 0x25a   : > { %v1221_v3 = vpop.f32.mrf.mxu1 }
 0x25b   : > { %v1263_v55 = vpack.c.bf16 %v1221_v3, %v3567_v56  ;;  %v1258_v56 = vpack.c.bf16 %v3553_v38, %v3549_v36  ;;  %v2944_v36 = vld [vmem:[#allocation11 + $0xa4] ss:$8 sps:$4 sm:$0xff]   ;;  %v2942_v38 = vld [vmem:[#allocation11 + $0xa0] ss:$8 sps:$4 sm:$0xff]  }
 0x25c   : > { %v1225_v4 = vpop.f32.mrf.mxu1 }
 0x25e   : > { %v1227_v8 = vpop.f32.mrf.mxu1 }
 0x260   : > { %v1229_v9 = vpop.f32.mrf.mxu1 }
 0x261   : > { %v1264_v54 = vpack.c.bf16 %v1229_v9, %v1225_v4 }
 0x262   : > { %v1231_v14 = vpop.f32.mrf.mxu1 }
 0x263   : > { %v1265_v63 = vpack.c.bf16 %v1231_v14, %v1227_v8  ;;  %v1443_v14 = vunpack.c.l.bf16 %v3464_v10 }
 0x264   : > { %v1235_v15 = vpop.f32.mrf.mxu1 }
 0x266   : > { %v1237_v21 = vpop.f32.mrf.mxu1 }
 0x268   : > { %v1239_v41 = vpop.f32.mrf.mxu1 }
 0x269   : > { %v1266_v44 = vpack.c.bf16 %v1239_v41, %v1235_v15 }
 0x26a   : > { %v1241_v48 = vpop.f32.mrf.mxu1 }
 0x26b   : > { %v1267_v25 = vpack.c.bf16 %v1241_v48, %v1237_v21  ;;  %v1262_v21 = vpack.c.bf16 %v3569_v57, %v3565_v52  ;;  %v2948_v52 = vld [vmem:[#allocation11 + $0x80] ss:$8 sps:$4 sm:$0xff]  }
 0x26c   : > { %v1245_v50 = vpop.f32.mrf.mxu1  ;;  %v1270_v57 = vld [vmem:[%s3929_s5] sm:$0x3] }
 0x26d   : > { %v3638_v3 = vrot.slane %v1270_v57, %v3448_v59  ;;  %v3641_v4 = vrot.slane %v1270_v57, %v3453_v61 }
 0x26e   : > { %v1247_v60 = vpop.f32.mrf.mxu1 }
 0x270   : > { %v1249_v1 = vpop.f32.mrf.mxu1 }
 0x271   : > { %v1268_v0 = vpack.c.bf16 %v1249_v1, %v1245_v50  ;;  %v1444_v50 = vunpack.c.h.bf16 %v3464_v10 }
 0x272   : > { %v1251_v11 = vpop.f32.mrf.mxu1 }
 0x273   : > { %v1269_v12 = vpack.c.bf16 %v1251_v11, %v1247_v60 }
 0x275   : > { %1330 = vmatprep.subr.bf16.mxu0 %v1269_v12  ;;  %v1446_v12 = vunpack.c.h.bf16 %v3468_v17 }
 0x276   : > { %1331 = vmatpush1.bf16.msra.mxu0 %v1268_v0  ;;  %v1261_v0 = vpack.c.bf16 %v3563_v51, %v3559_v45  ;;  %v2947_v45 = vld [vmem:[#allocation11 + $0x94] ss:$8 sps:$4 sm:$0xff]   ;;  %v2950_v51 = vld [vmem:[#allocation11 + $0x84] ss:$8 sps:$4 sm:$0xff]  }
 0x277   : > { %1332 = vmatprep.subr.bf16.mxu0 %v1267_v25  ;;  %v1260_v25 = vpack.c.bf16 %v3561_v47, %v3557_v40  ;;  %v3961_v40 = vpack.c.bf16 %v3533_v27, %v3527_v23  ;;  %v3605_v23 = vld [vmem:[%s3417_s19 + $0x10] sm:$0xff]   ;;  %v3620_v27 = vld [vmem:[%s3417_s19 + $0x28] sm:$0xff]  }
 0x278   : > { %v2945_v47 = vld [vmem:[#allocation11 + $0x90] ss:$8 sps:$4 sm:$0xff]  }
 0x27a   : > { %1333 = vmatpush1.bf16.msra.mxu0 %v1266_v44 }
 0x27b   : > { %1334 = vmatprep.subr.bf16.mxu0 %v1265_v63  ;;  %v1259_v63 = vpack.c.bf16 %v3555_v39, %v3551_v37  ;;  %v3592_v37 = vld [vmem:[%s3417_s19] sm:$0xff]   ;;  %v3962_v39 = vpack.c.bf16 %v3529_v62, %v3525_v22  ;;  %v3610_v22 = vld [vmem:[%s3417_s19 + $0x18] sm:$0xff]  }
 0x27c   : > { %v3615_v62 = vld [vmem:[%s3417_s19 + $0x20] sm:$0xff]   ;;  %s3091_s19 = scalar_lea.vmem %s3090_s13, 8192 }
 0x27d   : > { %p3093_p2 = scmp.lt.s32.totalorder %s3091_s19, %s3085_s6 }
 0x27e   : > { %1335 = vmatpush1.bf16.msra.mxu0 %v1264_v54 }
 0x27f   : > { %1336 = vmatprep.subr.bf16.mxu0 %v1263_v55  ;;  %v1447_v55 = vunpack.c.l.bf16 %v3472_v26  ;;  %p3094_p10 = por %p3093_p2, %p3092_p9 }
 0x281   : > { %p3095_p13 = pnand %p3094_p10, %p3088_p7 }
 0x282   : > { %1337 = vmatpush1.bf16.msra.mxu0 %v1262_v21 }
 0x283   : > { %1338 = vmatprep.subr.bf16.mxu0 %v1261_v0 }
 0x286   : > { %1339 = vmatpush1.bf16.msra.mxu0 %v1260_v25 }
 0x287   : > { %1340 = vmatprep.subr.bf16.mxu0 %v1259_v63 }
 0x28a   : > { %1341 = vmatpush1.bf16.msra.mxu0 %v1258_v56  ;;  %v1448_v56 = vunpack.c.h.bf16 %v3472_v26 }
 0x28b   : > { %1342 = vmatprep.subr.bf16.mxu0 %v1257_v34  ;;  %v2939_v34 = vld [vmem:[#allocation11 + $0xb0] ss:$8 sps:$4 sm:$0xff]  }
 0x28e   : > { %1343 = vmatpush1.bf16.msra.mxu0 %v1256_v31  ;;  %v2941_v31 = vld [vmem:[#allocation11 + $0xb4] ss:$8 sps:$4 sm:$0xff]  }
 0x28f   : > { %1344 = vmatprep.subr.bf16.mxu0 %v3961_v40  ;;  %1963 = vmatprep.subr.bf16.mxu1 %v2941_v31 }
 0x290   : > { %1964 = vmatpush2.bf16.msra.mxu1 %v2939_v34 }
 0x291   : > { %1965 = vmatprep.subr.bf16.mxu1 %v2944_v36 }
 0x292   : > { %1345 = vmatpush1.bf16.msra.mxu0 %v3962_v39 }
 0x294   : > { %1966 = vmatpush2.bf16.msra.mxu1 %v2942_v38 }
 0x295   : > { %1363 = vmatmul.mubr.bf16.vlgmr.msra.gmra.mxu0 %v3592_v37  ;;  %1967 = vmatprep.subr.bf16.mxu1 %v2947_v45 }
 0x296   : > { %1372 = vmatprep.mubr.bf16.mxu0 %v3963_v29 }
 0x298   : > { %1968 = vmatpush2.bf16.msra.mxu1 %v2945_v47  ;;  %v1449_v47 = vunpack.c.l.bf16 %v3476_v33 }
 0x299   : > { %1969 = vmatprep.subr.bf16.mxu1 %v2950_v51 }
 0x29c   : > { %1970 = vmatpush2.bf16.msra.mxu1 %v2948_v52  ;;  %v1450_v52 = vunpack.c.h.bf16 %v3476_v33  ;;  %v1452_v33 = vunpack.c.h.bf16 %v3480_v42 }
 0x29d   : > { %1373 = vmatmul.mubr.bf16.gmra.mxu0 %v3600_v32 }
 0x29e   : > { %1382 = vmatprep.mubr.bf16.mxu0 %v3963_v29 }
 0x2a5   : > { %1383 = vmatmul.mubr.bf16.gmra.mxu0 %v3605_v23 }
 0x2a6   : > { %1392 = vmatprep.mubr.bf16.mxu0 %v3963_v29 }
 0x2ad   : > { %1393 = vmatmul.mubr.bf16.gmra.mxu0 %v3610_v22 }
 0x2ae   : > { %1402 = vmatprep.mubr.bf16.mxu0 %v3963_v29 }
 0x2b5   : > { %1403 = vmatmul.mubr.bf16.gmra.mxu0 %v3615_v62 }
 0x2b6   : > { %1412 = vmatprep.mubr.bf16.mxu0 %v3963_v29 }
 0x2bd   : > { %1413 = vmatmul.mubr.bf16.gmra.mxu0 %v3620_v27 }
 0x2be   : > { %1422 = vmatprep.mubr.bf16.mxu0 %v3963_v29 }
 0x2c5   : > { %1423 = vmatmul.mubr.bf16.gmra.mxu0 %v3625_v28 }
 0x2c6   : > { %1432 = vmatprep.mubr.bf16.mxu0 %v3963_v29 }
 0x2cd   : > { %1433 = vmatmul.mubr.bf16.gmra.mxu0 %v3630_v30 }
 0x2ce   : > { %2112 = vmatprep.mubr.bf16.mxu0 %v3963_v29 }
 0x355   : > { %v1364_v8 = vpop.f32.mrf.mxu0 }
 0x356   : > { %v1365_v9 = vadd.f32 %v1364_v8, %v3638_v3 }
 0x357   : > { %v1366_v15 = vpop.f32.mrf.mxu0 }
 0x358   : > { %v1475_v41 = vadd.f32 %v1443_v14, %v1365_v9  ;;  %v1367_v48 = vadd.f32 %v1366_v15, %v3641_v4 }
 0x359   : > { %v1368_v60 = vpop.f32.mrf.mxu0 }
 0x35a   : > { %v1476_v1 = vadd.f32 %v1444_v50, %v1367_v48  ;;  %v1369_v5 = vadd.f32 %v1368_v60, %v3638_v3  ;;  %v1507_v18 = vmax.f32 %v1475_v41, 0.0  ;;  %v1451_v41 = vunpack.c.l.bf16 %v3480_v42 }
 0x35b   : > { %v1370_v11 = vpop.f32.mrf.mxu0 }
 0x35c   : > { %v1508_v20 = vmax.f32 %v1476_v1, 0.0  ;;  %v1477_v44 = vadd.f32 %v1445_v7, %v1369_v5  ;;  %v1371_v46 = vadd.f32 %v1370_v11, %v3641_v4 }
 0x35d   : > { %v1374_v54 = vpop.f32.mrf.mxu0 }
 0x35e   : > { %v3652_v21 = vpack.c.bf16 %v1508_v20, %v1507_v18  ;;  %v1509_v10 = vmax.f32 %v1477_v44, 0.0  ;;  %v1478_v0 = vadd.f32 %v1446_v12, %v1371_v46  ;;  %v1375_v25 = vadd.f32 %v1374_v54, %v3638_v3 }
 0x35f   : > { %v1376_v63 = vpop.f32.mrf.mxu0 }
 0x360   : > { %v2694_v40 = vpack.c.bf16 %v1509_v10, %v1507_v18  ;;  %v1510_v39 = vmax.f32 %v1478_v0, 0.0  ;;  %v1479_v17 = vadd.f32 %v1447_v55, %v1375_v25  ;;  %v1377_v31 = vadd.f32 %v1376_v63, %v3641_v4 }
 0x361   : > { %v1378_v34 = vpop.f32.mrf.mxu0  ;;  %v1453_v55 = vunpack.c.l.bf16 %v3484_v49  ;;  %v1454_v0 = vunpack.c.h.bf16 %v3484_v49  ;;  %v1456_v49 = vunpack.c.h.bf16 %v3488_v58 }
 0x362   : > { %v3657_v36 = vpack.c.bf16 %v1510_v39, %v1509_v10  ;;  %v1480_v38 = vadd.f32 %v1448_v56, %v1377_v31  ;;  %v1379_v45 = vadd.f32 %v1378_v34, %v3638_v3  ;;  %v2695_v57 = vpack.c.bf16 %v1510_v39, %v1508_v20 }
 0x363   : > { %v1380_v51 = vpop.f32.mrf.mxu0  ;;  %v1511_v8 = vmax.f32 %v1479_v17, 0.0  ;;  %v1455_v17 = vunpack.c.l.bf16 %v3488_v58 }
 0x364   : > { %v1512_v9 = vmax.f32 %v1480_v38, 0.0  ;;  %v1481_v26 = vadd.f32 %v1449_v47, %v1379_v45  ;;  %v1381_v14 = vadd.f32 %v1380_v51, %v3641_v4  ;;  %1971 = vmatprep.mubr.bf16.mxu1 %v2695_v57 }
 0x365   : > { %v1384_v15 = vpop.f32.mrf.mxu0  ;;  %1972 = vmatmul.mubr.bf16.vlgmr.msra.gmra.mxu1 %v2694_v40 }
 0x366   : > { %v3664_v48 = vpack.c.bf16 %v1512_v9, %v1511_v8  ;;  %v1513_v50 = vmax.f32 %v1481_v26, 0.0  ;;  %v1482_v60 = vadd.f32 %v1450_v52, %v1381_v14  ;;  %v1385_v1 = vadd.f32 %v1384_v15, %v3638_v3 }
 0x367   : > { %v1386_v5 = vpop.f32.mrf.mxu0 }
 0x368   : > { %v1514_v7 = vmax.f32 %v1482_v60, 0.0  ;;  %v1483_v11 = vadd.f32 %v1451_v41, %v1385_v1  ;;  %v1387_v12 = vadd.f32 %v1386_v5, %v3641_v4  ;;  %v2696_v18 = vpack.c.bf16 %v1513_v50, %v1511_v8 }
 0x369   : > { %v1388_v20 = vpop.f32.mrf.mxu0  ;;  %v1457_v41 = vunpack.c.l.bf16 %v3492_v6  ;;  %v1458_v60 = vunpack.c.h.bf16 %v3492_v6  ;;  %v1460_v6 = vunpack.c.h.bf16 %v3496_v16 }
 0x36a   : > { %v3669_v44 = vpack.c.bf16 %v1514_v7, %v1513_v50  ;;  %v1484_v46 = vadd.f32 %v1452_v33, %v1387_v12  ;;  %v1389_v54 = vadd.f32 %v1388_v20, %v3638_v3  ;;  %v2697_v25 = vpack.c.bf16 %v1514_v7, %v1512_v9 }
 0x36b   : > { %v1390_v10 = vpop.f32.mrf.mxu0  ;;  %v1515_v63 = vmax.f32 %v1483_v11, 0.0  ;;  %v1459_v12 = vunpack.c.l.bf16 %v3496_v16 }
 0x36c   : > { %v1516_v56 = vmax.f32 %v1484_v46, 0.0  ;;  %v1485_v42 = vadd.f32 %v1453_v55, %v1389_v54  ;;  %v1391_v40 = vadd.f32 %v1390_v10, %v3641_v4  ;;  %1981 = vmatprep.mubr.bf16.mxu1 %v2697_v25 }
 0x36d   : > { %v1394_v39 = vpop.f32.mrf.mxu0  ;;  %1982 = vmatmul.mubr.bf16.gmra.mxu1 %v2696_v18 }
 0x36e   : > { %v3676_v31 = vpack.c.bf16 %v1516_v56, %v1515_v63  ;;  %v1517_v34 = vmax.f32 %v1485_v42, 0.0  ;;  %v1486_v38 = vadd.f32 %v1454_v0, %v1391_v40  ;;  %v1395_v45 = vadd.f32 %v1394_v39, %v3638_v3 }
 0x36f   : > { %v1396_v47 = vpop.f32.mrf.mxu0 }
 0x370   : > { %v1518_v51 = vmax.f32 %v1486_v38, 0.0  ;;  %v1487_v52 = vadd.f32 %v1455_v17, %v1395_v45  ;;  %v1397_v57 = vadd.f32 %v1396_v47, %v3641_v4  ;;  %v2698_v8 = vpack.c.bf16 %v1517_v34, %v1515_v63 }
 0x371   : > { %v1398_v9 = vpop.f32.mrf.mxu0  ;;  %v1461_v17 = vunpack.c.l.bf16 %v3500_v24  ;;  %v1462_v38 = vunpack.c.h.bf16 %v3500_v24  ;;  %v1464_v24 = vunpack.c.h.bf16 %v3504_v35 }
 0x372   : > { %v3681_v26 = vpack.c.bf16 %v1518_v51, %v1517_v34  ;;  %v1488_v14 = vadd.f32 %v1456_v49, %v1397_v57  ;;  %v1399_v15 = vadd.f32 %v1398_v9, %v3638_v3  ;;  %v2699_v1 = vpack.c.bf16 %v1518_v51, %v1516_v56 }
 0x373   : > { %v1400_v50 = vpop.f32.mrf.mxu0  ;;  %v1519_v5 = vmax.f32 %v1487_v52, 0.0  ;;  %v1463_v57 = vunpack.c.l.bf16 %v3504_v35 }
 0x374   : > { %v1520_v33 = vmax.f32 %v1488_v14, 0.0  ;;  %v1489_v58 = vadd.f32 %v1457_v41, %v1399_v15  ;;  %v1401_v7 = vadd.f32 %v1400_v50, %v3641_v4  ;;  %1991 = vmatprep.mubr.bf16.mxu1 %v2699_v1 }
 0x375   : > { %v1404_v11 = vpop.f32.mrf.mxu0  ;;  %1992 = vmatmul.mubr.bf16.gmra.mxu1 %v2698_v8 }
 0x376   : > { %v3688_v18 = vpack.c.bf16 %v1520_v33, %v1519_v5  ;;  %v1521_v20 = vmax.f32 %v1489_v58, 0.0  ;;  %v1490_v46 = vadd.f32 %v1458_v60, %v1401_v7  ;;  %v1405_v54 = vadd.f32 %v1404_v11, %v3638_v3 }
 0x377   : > { %v1406_v55 = vpop.f32.mrf.mxu0 }
 0x378   : > { %v1522_v10 = vmax.f32 %v1490_v46, 0.0  ;;  %v1491_v0 = vadd.f32 %v1459_v12, %v1405_v54  ;;  %v1407_v25 = vadd.f32 %v1406_v55, %v3641_v4  ;;  %v2700_v63 = vpack.c.bf16 %v1521_v20, %v1519_v5 }
 0x379   : > { %v1408_v56 = vpop.f32.mrf.mxu0  ;;  %v1465_v12 = vunpack.c.l.bf16 %v3508_v43  ;;  %v1466_v46 = vunpack.c.h.bf16 %v3508_v43  ;;  %v1468_v43 = vunpack.c.h.bf16 %v3512_v53 }
 0x37a   : > { %v3693_v42 = vpack.c.bf16 %v1522_v10, %v1521_v20  ;;  %v1492_v40 = vadd.f32 %v1460_v6, %v1407_v25  ;;  %v1409_v39 = vadd.f32 %v1408_v56, %v3638_v3  ;;  %v2701_v45 = vpack.c.bf16 %v1522_v10, %v1520_v33 }
 0x37b   : > { %v1410_v34 = vpop.f32.mrf.mxu0  ;;  %v1523_v47 = vmax.f32 %v1491_v0, 0.0  ;;  %v1467_v25 = vunpack.c.l.bf16 %v3512_v53 }
 0x37c   : > { %v1524_v49 = vmax.f32 %v1492_v40, 0.0  ;;  %v1493_v16 = vadd.f32 %v1461_v17, %v1409_v39  ;;  %v1411_v51 = vadd.f32 %v1410_v34, %v3641_v4  ;;  %2001 = vmatprep.mubr.bf16.mxu1 %v2701_v45 }
 0x37d   : > { %v1414_v52 = vpop.f32.mrf.mxu0  ;;  %2002 = vmatmul.mubr.bf16.gmra.mxu1 %v2700_v63 }
 0x37e   : > { %v3700_v8 = vpack.c.bf16 %v1524_v49, %v1523_v47  ;;  %v1525_v9 = vmax.f32 %v1493_v16, 0.0  ;;  %v1494_v14 = vadd.f32 %v1462_v38, %v1411_v51  ;;  %v1415_v15 = vadd.f32 %v1414_v52, %v3638_v3 }
 0x37f   : > { %v1416_v41 = vpop.f32.mrf.mxu0 }
 0x380   : > { %v1526_v50 = vmax.f32 %v1494_v14, 0.0  ;;  %v1495_v60 = vadd.f32 %v1463_v57, %v1415_v15  ;;  %v1417_v1 = vadd.f32 %v1416_v41, %v3641_v4  ;;  %v2702_v5 = vpack.c.bf16 %v1525_v9, %v1523_v47 }
 0x381   : > { %v1418_v33 = vpop.f32.mrf.mxu0  ;;  %v1469_v57 = vunpack.c.l.bf16 %v3516_v2  ;;  %v1470_v14 = vunpack.c.h.bf16 %v3516_v2  ;;  %v1472_v2 = vunpack.c.h.bf16 %v3520_v13 }
 0x382   : > { %v3705_v58 = vpack.c.bf16 %v1526_v50, %v1525_v9  ;;  %v1496_v7 = vadd.f32 %v1464_v24, %v1417_v1  ;;  %v1419_v11 = vadd.f32 %v1418_v33, %v3638_v3  ;;  %v2703_v54 = vpack.c.bf16 %v1526_v50, %v1524_v49 }
 0x383   : > { %v1420_v20 = vpop.f32.mrf.mxu0  ;;  %v1527_v55 = vmax.f32 %v1495_v60, 0.0  ;;  %v1471_v1 = vunpack.c.l.bf16 %v3520_v13 }
 0x384   : > { %v1528_v6 = vmax.f32 %v1496_v7, 0.0  ;;  %v1497_v35 = vadd.f32 %v1465_v12, %v1419_v11  ;;  %v1421_v10 = vadd.f32 %v1420_v20, %v3641_v4  ;;  %2011 = vmatprep.mubr.bf16.mxu1 %v2703_v54 }
 0x385   : > { %v1424_v0 = vpop.f32.mrf.mxu0  ;;  %2012 = vmatmul.mubr.bf16.gmra.mxu1 %v2702_v5 }
 0x386   : > { %v3712_v63 = vpack.c.bf16 %v1528_v6, %v1527_v55  ;;  %v1529_v56 = vmax.f32 %v1497_v35, 0.0  ;;  %v1498_v40 = vadd.f32 %v1466_v46, %v1421_v10  ;;  %v1425_v39 = vadd.f32 %v1424_v0, %v3638_v3 }
 0x387   : > { %v1426_v17 = vpop.f32.mrf.mxu0 }
 0x388   : > { %v1530_v34 = vmax.f32 %v1498_v40, 0.0  ;;  %v1499_v38 = vadd.f32 %v1467_v25, %v1425_v39  ;;  %v1427_v45 = vadd.f32 %v1426_v17, %v3641_v4  ;;  %v2704_v47 = vpack.c.bf16 %v1529_v56, %v1527_v55 }
 0x389   : > { %v1428_v49 = vpop.f32.mrf.mxu0  ;;  %v1473_v25 = vunpack.c.l.bf16 %v3523_v19  ;;  %v1474_v40 = vunpack.c.h.bf16 %v3523_v19 }
 0x38a   : > { %v3717_v16 = vpack.c.bf16 %v1530_v34, %v1529_v56  ;;  %v1500_v51 = vadd.f32 %v1468_v43, %v1427_v45  ;;  %v1429_v52 = vadd.f32 %v1428_v49, %v3638_v3  ;;  %v2705_v15 = vpack.c.bf16 %v1530_v34, %v1528_v6 }
 0x38b   : > { %v1430_v9 = vpop.f32.mrf.mxu0  ;;  %v1531_v41 = vmax.f32 %v1499_v38, 0.0 }
 0x38c   : > { %v1532_v24 = vmax.f32 %v1500_v51, 0.0  ;;  %v1501_v53 = vadd.f32 %v1469_v57, %v1429_v52  ;;  %v1431_v50 = vadd.f32 %v1430_v9, %v3641_v4  ;;  %2021 = vmatprep.mubr.bf16.mxu1 %v2705_v15 }
 0x38d   : > { %v1434_v60 = vpop.f32.mrf.mxu0  ;;  %2022 = vmatmul.mubr.bf16.gmra.mxu1 %v2704_v47 }
 0x38e   : > { %v3724_v5 = vpack.c.bf16 %v1532_v24, %v1531_v41  ;;  %v1533_v33 = vmax.f32 %v1501_v53, 0.0  ;;  %v1502_v7 = vadd.f32 %v1470_v14, %v1431_v50  ;;  %v1435_v11 = vadd.f32 %v1434_v60, %v3638_v3 }
 0x38f   : > { %v1436_v12 = vpop.f32.mrf.mxu0 }
 0x390   : > { %v1534_v20 = vmax.f32 %v1502_v7, 0.0  ;;  %v1503_v46 = vadd.f32 %v1471_v1, %v1435_v11  ;;  %v1437_v54 = vadd.f32 %v1436_v12, %v3641_v4  ;;  %v2706_v55 = vpack.c.bf16 %v1533_v33, %v1531_v41 }
 0x391   : > { %v1438_v6 = vpop.f32.mrf.mxu0 }
 0x392   : > { %v3729_v35 = vpack.c.bf16 %v1534_v20, %v1533_v33  ;;  %v1504_v10 = vadd.f32 %v1472_v2, %v1437_v54  ;;  %v1439_v0 = vadd.f32 %v1438_v6, %v3638_v3  ;;  %v2707_v39 = vpack.c.bf16 %v1534_v20, %v1532_v24 }
 0x393   : > { %v1440_v56 = vpop.f32.mrf.mxu0  ;;  %v1535_v17 = vmax.f32 %v1503_v46, 0.0 }
 0x394   : > { %v1536_v43 = vmax.f32 %v1504_v10, 0.0  ;;  %v1505_v13 = vadd.f32 %v1473_v25, %v1439_v0  ;;  %v1441_v34 = vadd.f32 %v1440_v56, %v3641_v4  ;;  %2031 = vmatprep.mubr.bf16.mxu1 %v2707_v39 }
 0x395   : > { %2032 = vmatmul.mubr.bf16.gmra.mxu1 %v2706_v55 }
 0x396   : > { %v3735_v38 = vpack.c.bf16 %v1536_v43, %v1535_v17  ;;  %v1537_v45 = vmax.f32 %v1505_v13, 0.0  ;;  %v1506_v47 = vadd.f32 %v1474_v40, %v1441_v34 }
 0x398   : > { %v1538_v49 = vmax.f32 %v1506_v47, 0.0  ;;  %v2708_v51 = vpack.c.bf16 %v1537_v45, %v1535_v17 }
 0x39a   : > { %v3737_v3 = vpack.c.bf16 %v1538_v49, %v1537_v45  ;;  %v2709_v52 = vpack.c.bf16 %v1538_v49, %v1536_v43 }
 0x39c   : > { %2041 = vmatprep.mubr.bf16.mxu1 %v2709_v52 }
 0x39d   : > { %2042 = vmatmul.mubr.bf16.gmra.mxu1 %v2708_v51 }
 0x39e   : > { %2172 = vmatprep.mubr.bf16.mxu1 %v3963_v29 }
 0x425   : > { %v1973_v19 = vpop.f32.mrf.mxu1 }
 0x427   : > { %v1975_v57 = vpop.f32.mrf.mxu1 }
 0x429   : > { %v1977_v9 = vpop.f32.mrf.mxu1 }
 0x42a   : > { %v3740_v14 = vpack.c.bf16 %v1977_v9, %v1973_v19 }
 0x42b   : > { %v1979_v4 = vpop.f32.mrf.mxu1 }
 0x42c   : > { %v3742_v15 = vpack.c.bf16 %v1979_v4, %v1975_v57 }
 0x42d   : > { %v1983_v41 = vpop.f32.mrf.mxu1 }
 0x42f   : > { %v1985_v24 = vpop.f32.mrf.mxu1 }
 0x431   : > { %v1987_v53 = vpop.f32.mrf.mxu1 }
 0x432   : > { %v3744_v50 = vpack.c.bf16 %v1987_v53, %v1983_v41 }
 0x433   : > { %v1989_v60 = vpop.f32.mrf.mxu1 }
 0x434   : > { %v2055_v1 = vpack.c.bf16 %v1989_v60, %v1985_v24 }
 0x435   : > { %v1993_v33 = vpop.f32.mrf.mxu1 }
 0x437   : > { %v1995_v7 = vpop.f32.mrf.mxu1 }
 0x439   : > { %v1997_v11 = vpop.f32.mrf.mxu1 }
 0x43b   : > { %v1999_v12 = vpop.f32.mrf.mxu1 }
 0x43d   : > { %v2003_v2 = vpop.f32.mrf.mxu1 }
 0x43f   : > { %v2005_v20 = vpop.f32.mrf.mxu1 }
 0x441   : > { %v2007_v46 = vpop.f32.mrf.mxu1 }
 0x443   : > { %v2009_v54 = vpop.f32.mrf.mxu1 }
 0x444   : > { %v2059_v60 = vpack.c.bf16 %v2009_v54, %v2005_v20  ;;  %v2196_v20 = vunpack.c.h.bf16 %v3657_v36 }
 0x445   : > { %v2013_v55 = vpop.f32.mrf.mxu1 }
 0x447   : > { %v2015_v6 = vpop.f32.mrf.mxu1 }
 0x449   : > { %v2017_v10 = vpop.f32.mrf.mxu1 }
 0x44a   : > { %v2060_v53 = vpack.c.bf16 %v2017_v10, %v2013_v55  ;;  %v2219_v10 = vunpack.c.l.bf16 %v3729_v35 }
 0x44b   : > { %v2019_v0 = vpop.f32.mrf.mxu1 }
 0x44c   : > { %v2061_v24 = vpack.c.bf16 %v2019_v0, %v2015_v6 }
 0x44d   : > { %v2023_v25 = vpop.f32.mrf.mxu1 }
 0x44f   : > { %v2025_v56 = vpop.f32.mrf.mxu1 }
 0x451   : > { %v2027_v40 = vpop.f32.mrf.mxu1 }
 0x452   : > { %v2062_v41 = vpack.c.bf16 %v2027_v40, %v2023_v25  ;;  %v2220_v40 = vunpack.c.h.bf16 %v3729_v35 }
 0x453   : > { %v2029_v39 = vpop.f32.mrf.mxu1 }
 0x454   : > { %v2063_v4 = vpack.c.bf16 %v2029_v39, %v2025_v56  ;;  %v2056_v56 = vpack.c.bf16 %v1997_v11, %v1993_v33 }
 0x455   : > { %v2033_v17 = vpop.f32.mrf.mxu1 }
 0x457   : > { %v2035_v43 = vpop.f32.mrf.mxu1 }
 0x459   : > { %v2037_v13 = vpop.f32.mrf.mxu1 }
 0x45a   : > { %v2064_v9 = vpack.c.bf16 %v2037_v13, %v2033_v17 }
 0x45b   : > { %v2039_v34 = vpop.f32.mrf.mxu1 }
 0x45c   : > { %v2065_v57 = vpack.c.bf16 %v2039_v34, %v2035_v43  ;;  %v2058_v43 = vpack.c.bf16 %v2007_v46, %v2003_v2  ;;  %v2057_v34 = vpack.c.bf16 %v1999_v12, %v1995_v7  ;;  %v2195_v12 = vunpack.c.l.bf16 %v3657_v36 }
 0x45d   : > { %v2043_v45 = vpop.f32.mrf.mxu1 }
 0x45f   : > { %v2045_v47 = vpop.f32.mrf.mxu1 }
 0x461   : > { %v2047_v49 = vpop.f32.mrf.mxu1 }
 0x462   : > { %v2066_v19 = vpack.c.bf16 %v2047_v49, %v2043_v45 }
 0x463   : > { %v2049_v51 = vpop.f32.mrf.mxu1 }
 0x464   : > { %v2067_v52 = vpack.c.bf16 %v2049_v51, %v2045_v47  ;;  %v2197_v51 = vunpack.c.l.bf16 %v3664_v48 }
 0x466   : > { %2080 = vmatprep.subr.bf16.mxu0 %v2067_v52  ;;  %2710 = vmatprep.subr.bf16.mxu1 %v2067_v52  ;;  %v2221_v52 = vunpack.c.l.bf16 %v3735_v38 }
 0x467   : > { %2081 = vmatpush1.bf16.msra.mxu0 %v2066_v19  ;;  %2718 = vmatpush1.bf16.msra.mxu1 %v2066_v19 }
 0x468   : > { %2082 = vmatprep.subr.bf16.mxu0 %v2065_v57  ;;  %2711 = vmatprep.subr.bf16.mxu1 %v2065_v57 }
 0x46b   : > { %2083 = vmatpush1.bf16.msra.mxu0 %v2064_v9  ;;  %2719 = vmatpush1.bf16.msra.mxu1 %v2064_v9 }
 0x46c   : > { %2084 = vmatprep.subr.bf16.mxu0 %v2063_v4  ;;  %2712 = vmatprep.subr.bf16.mxu1 %v2063_v4 }
 0x46f   : > { %2085 = vmatpush1.bf16.msra.mxu0 %v2062_v41  ;;  %2720 = vmatpush1.bf16.msra.mxu1 %v2062_v41 }
 0x470   : > { %2086 = vmatprep.subr.bf16.mxu0 %v2061_v24  ;;  %2713 = vmatprep.subr.bf16.mxu1 %v2061_v24 }
 0x473   : > { %2087 = vmatpush1.bf16.msra.mxu0 %v2060_v53  ;;  %2721 = vmatpush1.bf16.msra.mxu1 %v2060_v53 }
 0x474   : > { %2088 = vmatprep.subr.bf16.mxu0 %v2059_v60  ;;  %2714 = vmatprep.subr.bf16.mxu1 %v2059_v60  ;;  %v2198_v60 = vunpack.c.h.bf16 %v3664_v48 }
 0x477   : > { %2089 = vmatpush1.bf16.msra.mxu0 %v2058_v43  ;;  %2722 = vmatpush1.bf16.msra.mxu1 %v2058_v43 }
 0x478   : > { %2090 = vmatprep.subr.bf16.mxu0 %v2057_v34  ;;  %2715 = vmatprep.subr.bf16.mxu1 %v2057_v34  ;;  %v2199_v34 = vunpack.c.l.bf16 %v3669_v44 }
 0x47b   : > { %2091 = vmatpush1.bf16.msra.mxu0 %v2056_v56  ;;  %2723 = vmatpush1.bf16.msra.mxu1 %v2056_v56 }
 0x47c   : > { %2092 = vmatprep.subr.bf16.mxu0 %v2055_v1  ;;  %2716 = vmatprep.subr.bf16.mxu1 %v2055_v1 }
 0x47f   : > { %2093 = vmatpush1.bf16.msra.mxu0 %v3744_v50  ;;  %2724 = vmatpush1.bf16.msra.mxu1 %v3744_v50 }
 0x480   : > { %2094 = vmatprep.subr.bf16.mxu0 %v3742_v15  ;;  %2717 = vmatprep.subr.bf16.mxu1 %v3742_v15  ;;  %v2194_v15 = vunpack.c.h.bf16 %v3652_v21 }
 0x483   : > { %2095 = vmatpush1.bf16.msra.mxu0 %v3740_v14  ;;  %2725 = vmatpush1.bf16.msra.mxu1 %v3740_v14 }
 0x486   : > { %2113 = vmatmul.mubr.bf16.vlgmr.msra.gmra.mxu0 %v3592_v37  ;;  %2173 = vmatmul.mubr.bf16.vlgmr.msra.gmra.mxu1 %v3625_v28  ;;  %v2068_v37 = vld [vmem:[%s3931_s7] sm:$0x3] }
 0x487   : > { %2122 = vmatprep.mubr.bf16.mxu0 %v3963_v29  ;;  %2182 = vmatprep.mubr.bf16.mxu1 %v3963_v29 }
 0x48e   : > { %2123 = vmatmul.mubr.bf16.gmra.mxu0 %v3600_v32  ;;  %2183 = vmatmul.mubr.bf16.gmra.mxu1 %v3630_v30  ;;  %v3770_v32 = vrot.slane %v2068_v37, %v3448_v59  ;;  %v2218_v59 = vunpack.c.h.bf16 %v3724_v5 }
 0x48f   : > { %2132 = vmatprep.mubr.bf16.mxu0 %v3963_v29 }
 0x496   : > { %2133 = vmatmul.mubr.bf16.gmra.mxu0 %v3605_v23  ;;  %v3773_v23 = vrot.slane %v2068_v37, %v3453_v61 }
 0x497   : > { %2142 = vmatprep.mubr.bf16.mxu0 %v3963_v29 }
 0x49e   : > { %2143 = vmatmul.mubr.bf16.gmra.mxu0 %v3610_v22 }
 0x49f   : > { %2152 = vmatprep.mubr.bf16.mxu0 %v3963_v29 }
 0x4a6   : > { %2153 = vmatmul.mubr.bf16.gmra.mxu0 %v3615_v62  ;;  %v2193_v62 = vunpack.c.l.bf16 %v3652_v21 }
 0x4a7   : > { %2162 = vmatprep.mubr.bf16.mxu0 %v3963_v29 }
 0x4ae   : > { %2163 = vmatmul.mubr.bf16.gmra.mxu0 %v3620_v27  ;;  %v2217_v27 = vunpack.c.l.bf16 %v3724_v5 }
 0x546   : > { %v2114_v28 = vpop.f32.mrf.mxu0  ;;  %v2174_v22 = vpop.f32.mrf.mxu1 }
 0x547   : > { %v2115_v30 = vadd.f32 %v2114_v28, %v3770_v32  ;;  %v2175_v29 = vadd.f32 %v2174_v22, %v3770_v32 }
 0x548   : > { %v2116_v14 = vpop.f32.mrf.mxu0  ;;  %v2176_v50 = vpop.f32.mrf.mxu1 }
 0x549   : > { %v2225_v1 = vadd.f32 %v2193_v62, %v2115_v30  ;;  %v2249_v61 = vadd.f32 %v2217_v27, %v2175_v29  ;;  %v2117_v33 = vadd.f32 %v2116_v14, %v3773_v23  ;;  %v2177_v7 = vadd.f32 %v2176_v50, %v3773_v23 }
 0x54a   : > { %v2118_v11 = vpop.f32.mrf.mxu0  ;;  %v2178_v2 = vpop.f32.mrf.mxu1  ;;  %v2222_v29 = vunpack.c.h.bf16 %v3735_v38  ;;  %v2223_v14 = vunpack.c.l.bf16 %v3737_v3 }
 0x54b   : > { %v2257_v46 = vmax.f32 %v2225_v1, 0.0  ;;  %v2281_v54 = vmax.f32 %v2249_v61, 0.0  ;;  %v2226_v55 = vadd.f32 %v2194_v15, %v2117_v33  ;;  %v2250_v6 = vadd.f32 %v2218_v59, %v2177_v7 }
 0x54c   : > { %v2119_v21 = vadd.f32 %v2118_v11, %v3770_v32  ;;  %v2179_v5 = vadd.f32 %v2178_v2, %v3770_v32  ;;  %v2120_v0 = vpop.f32.mrf.mxu0  ;;  %v2180_v25 = vpop.f32.mrf.mxu1  ;;  %v2200_v11 = vunpack.c.h.bf16 %v3669_v44 }
 0x54d   : > { %2289 = vst [vmem:[%s3790_s0] sm:$0xff] %v2257_v46  ;;  %2313 = vst [vmem:[%s3790_s0 + $0xc0] sm:$0xff] %v2281_v54  ;;  %v2258_v36 = vmax.f32 %v2226_v55, 0.0  ;;  %v2282_v39 = vmax.f32 %v2250_v6, 0.0  ;;  %v2121_v17 = vadd.f32 %v2120_v0, %v3773_v23  ;;  %v2181_v13 = vadd.f32 %v2180_v25, %v3773_v23 }
 0x54e   : > { %v2227_v45 = vadd.f32 %v2195_v12, %v2119_v21  ;;  %v2251_v47 = vadd.f32 %v2219_v10, %v2179_v5  ;;  %v2124_v49 = vpop.f32.mrf.mxu0  ;;  %v2184_v35 = vpop.f32.mrf.mxu1  ;;  %v2224_v12 = vunpack.c.h.bf16 %v3737_v3  ;;  %v2201_v25 = vunpack.c.l.bf16 %v3676_v31 }
 0x54f   : > { %2290 = vst [vmem:[%s3790_s0 + $0x8] sm:$0xff] %v2258_v36  ;;  %2314 = vst [vmem:[%s3790_s0 + $0xc8] sm:$0xff] %v2282_v39  ;;  %v2228_v19 = vadd.f32 %v2196_v20, %v2121_v17  ;;  %v2252_v57 = vadd.f32 %v2220_v40, %v2181_v13  ;;  %v2125_v9 = vadd.f32 %v2124_v49, %v3770_v32  ;;  %v2202_v13 = vunpack.c.h.bf16 %v3676_v31 }
 0x550   : > { %v2185_v4 = vadd.f32 %v2184_v35, %v3770_v32  ;;  %v2259_v41 = vmax.f32 %v2227_v45, 0.0  ;;  %v2283_v24 = vmax.f32 %v2251_v47, 0.0  ;;  %v2126_v53 = vpop.f32.mrf.mxu0  ;;  %v2186_v43 = vpop.f32.mrf.mxu1  ;;  %v2203_v35 = vunpack.c.l.bf16 %v3681_v26 }
 0x551   : > { %v2260_v56 = vmax.f32 %v2228_v19, 0.0  ;;  %v2284_v37 = vmax.f32 %v2252_v57, 0.0  ;;  %v2229_v28 = vadd.f32 %v2197_v51, %v2125_v9  ;;  %v2127_v30 = vadd.f32 %v2126_v53, %v3773_v23 }
 0x552   : > { %v2253_v22 = vadd.f32 %v2221_v52, %v2185_v4  ;;  %2291 = vst [vmem:[%s3790_s0 + $0x10] sm:$0xff] %v2259_v41  ;;  %2315 = vst [vmem:[%s3790_s0 + $0xd0] sm:$0xff] %v2283_v24  ;;  %v2187_v62 = vadd.f32 %v2186_v43, %v3773_v23  ;;  %v2128_v27 = vpop.f32.mrf.mxu0  ;;  %v2188_v48 = vpop.f32.mrf.mxu1  ;;  %v2204_v31 = vunpack.c.h.bf16 %v3681_v26  ;;  %v2205_v43 = vunpack.c.l.bf16 %v3688_v18 }
 0x553   : > { %2292 = vst [vmem:[%s3790_s0 + $0x18] sm:$0xff] %v2260_v56  ;;  %2316 = vst [vmem:[%s3790_s0 + $0xd8] sm:$0xff] %v2284_v37  ;;  %v2261_v15 = vmax.f32 %v2229_v28, 0.0  ;;  %v2129_v59 = vadd.f32 %v2128_v27, %v3770_v32  ;;  %v2189_v1 = vadd.f32 %v2188_v48, %v3770_v32  ;;  %v2230_v61 = vadd.f32 %v2198_v60, %v2127_v30 }
 0x554   : > { %v2285_v50 = vmax.f32 %v2253_v22, 0.0  ;;  %v2254_v33 = vadd.f32 %v2222_v29, %v2187_v62  ;;  %v2130_v7 = vpop.f32.mrf.mxu0  ;;  %v2190_v38 = vpop.f32.mrf.mxu1  ;;  %v2206_v22 = vunpack.c.h.bf16 %v3688_v18  ;;  %v2207_v27 = vunpack.c.l.bf16 %v3693_v42 }
 0x555   : > { %2293 = vst [vmem:[%s3790_s0 + $0x20] sm:$0xff] %v2261_v15  ;;  %v2231_v2 = vadd.f32 %v2199_v34, %v2129_v59  ;;  %v2255_v20 = vadd.f32 %v2223_v14, %v2189_v1  ;;  %v2131_v46 = vadd.f32 %v2130_v7, %v3773_v23  ;;  %v2191_v54 = vadd.f32 %v2190_v38, %v3773_v23 }
 0x556   : > { %2317 = vst [vmem:[%s3790_s0 + $0xe0] sm:$0xff] %v2285_v50  ;;  %v2262_v55 = vmax.f32 %v2230_v61, 0.0  ;;  %v2286_v6 = vmax.f32 %v2254_v33, 0.0  ;;  %v2134_v21 = vpop.f32.mrf.mxu0  ;;  %v2208_v59 = vunpack.c.h.bf16 %v3693_v42  ;;  %v2209_v7 = vunpack.c.l.bf16 %v3700_v8 }
 0x557   : > { %v2263_v5 = vmax.f32 %v2231_v2, 0.0  ;;  %v2287_v44 = vmax.f32 %v2255_v20, 0.0  ;;  %v2232_v10 = vadd.f32 %v2200_v11, %v2131_v46  ;;  %v2256_v0 = vadd.f32 %v2224_v12, %v2191_v54 }
 0x558   : > { %2294 = vst [vmem:[%s3790_s0 + $0x28] sm:$0xff] %v2262_v55  ;;  %2318 = vst [vmem:[%s3790_s0 + $0xe8] sm:$0xff] %v2286_v6  ;;  %v2135_v3 = vadd.f32 %v2134_v21, %v3770_v32  ;;  %v2136_v40 = vpop.f32.mrf.mxu0  ;;  %v2210_v20 = vunpack.c.h.bf16 %v3700_v8  ;;  %v2211_v6 = vunpack.c.l.bf16 %v3705_v58 }
 0x559   : > { %2295 = vst [vmem:[%s3790_s0 + $0x30] sm:$0xff] %v2263_v5  ;;  %2319 = vst [vmem:[%s3790_s0 + $0xf0] sm:$0xff] %v2287_v44  ;;  %v2264_v36 = vmax.f32 %v2232_v10, 0.0  ;;  %v2288_v39 = vmax.f32 %v2256_v0, 0.0  ;;  %v2137_v17 = vadd.f32 %v2136_v40, %v3773_v23  ;;  %v2212_v0 = vunpack.c.h.bf16 %v3705_v58 }
 0x55a   : > { %v2233_v45 = vadd.f32 %v2201_v25, %v2135_v3  ;;  %v2138_v47 = vpop.f32.mrf.mxu0  ;;  %v2214_v58 = vunpack.c.h.bf16 %v3712_v63 }
 0x55b   : > { %2296 = vst [vmem:[%s3790_s0 + $0x38] sm:$0xff] %v2264_v36  ;;  %2320 = vst [vmem:[%s3790_s0 + $0xf8] sm:$0xff] %v2288_v39  ;;  %v2234_v49 = vadd.f32 %v2202_v13, %v2137_v17  ;;  %v2139_v51 = vadd.f32 %v2138_v47, %v3770_v32  ;;  %v2213_v36 = vunpack.c.l.bf16 %v3712_v63  ;;  %v2216_v63 = vunpack.c.h.bf16 %v3717_v16 }
 0x55c   : > { %v2265_v52 = vmax.f32 %v2233_v45, 0.0  ;;  %v2140_v19 = vpop.f32.mrf.mxu0 }
 0x55d   : > { %v2266_v57 = vmax.f32 %v2234_v49, 0.0  ;;  %v2235_v9 = vadd.f32 %v2203_v35, %v2139_v51  ;;  %v2141_v4 = vadd.f32 %v2140_v19, %v3773_v23 }
 0x55e   : > { %2297 = vst [vmem:[%s3790_s0 + $0x40] sm:$0xff] %v2265_v52  ;;  %v2144_v41 = vpop.f32.mrf.mxu0  ;;  %v2215_v52 = vunpack.c.l.bf16 %v3717_v16 }
 0x55f   : > { %2298 = vst [vmem:[%s3790_s0 + $0x48] sm:$0xff] %v2266_v57  ;;  %v2267_v24 = vmax.f32 %v2235_v9, 0.0  ;;  %v2236_v53 = vadd.f32 %v2204_v31, %v2141_v4  ;;  %v2145_v60 = vadd.f32 %v2144_v41, %v3770_v32 }
 0x560   : > { %v2146_v34 = vpop.f32.mrf.mxu0 }
 0x561   : > { %2299 = vst [vmem:[%s3790_s0 + $0x50] sm:$0xff] %v2267_v24  ;;  %v2268_v56 = vmax.f32 %v2236_v53, 0.0  ;;  %v2237_v37 = vadd.f32 %v2205_v43, %v2145_v60  ;;  %v2147_v28 = vadd.f32 %v2146_v34, %v3773_v23 }
 0x562   : > { %v2148_v26 = vpop.f32.mrf.mxu0 }
 0x563   : > { %2300 = vst [vmem:[%s3790_s0 + $0x58] sm:$0xff] %v2268_v56  ;;  %v2269_v30 = vmax.f32 %v2237_v37, 0.0  ;;  %v2238_v62 = vadd.f32 %v2206_v22, %v2147_v28  ;;  %v2149_v29 = vadd.f32 %v2148_v26, %v3770_v32 }
 0x564   : > { %v2150_v48 = vpop.f32.mrf.mxu0 }
 0x565   : > { %2301 = vst [vmem:[%s3790_s0 + $0x60] sm:$0xff] %v2269_v30  ;;  %v2270_v14 = vmax.f32 %v2238_v62, 0.0  ;;  %v2239_v15 = vadd.f32 %v2207_v27, %v2149_v29  ;;  %v2151_v50 = vadd.f32 %v2150_v48, %v3773_v23 }
 0x566   : > { %v2154_v1 = vpop.f32.mrf.mxu0 }
 0x567   : > { %2302 = vst [vmem:[%s3790_s0 + $0x68] sm:$0xff] %v2270_v14  ;;  %v2271_v18 = vmax.f32 %v2239_v15, 0.0  ;;  %v2240_v61 = vadd.f32 %v2208_v59, %v2151_v50  ;;  %v2155_v33 = vadd.f32 %v2154_v1, %v3770_v32 }
 0x568   : > { %v2156_v11 = vpop.f32.mrf.mxu0 }
 0x569   : > { %2303 = vst [vmem:[%s3790_s0 + $0x70] sm:$0xff] %v2271_v18  ;;  %v2272_v38 = vmax.f32 %v2240_v61, 0.0  ;;  %v2241_v12 = vadd.f32 %v2209_v7, %v2155_v33  ;;  %v2157_v2 = vadd.f32 %v2156_v11, %v3773_v23 }
 0x56a   : > { %v2158_v46 = vpop.f32.mrf.mxu0 }
 0x56b   : > { %2304 = vst [vmem:[%s3790_s0 + $0x78] sm:$0xff] %v2272_v38  ;;  %v2273_v42 = vmax.f32 %v2241_v12, 0.0  ;;  %v2242_v54 = vadd.f32 %v2210_v20, %v2157_v2  ;;  %v2159_v55 = vadd.f32 %v2158_v46, %v3770_v32 }
 0x56c   : > { %v2160_v21 = vpop.f32.mrf.mxu0 }
 0x56d   : > { %2305 = vst [vmem:[%s3790_s0 + $0x80] sm:$0xff] %v2273_v42  ;;  %v2274_v5 = vmax.f32 %v2242_v54, 0.0  ;;  %v2243_v44 = vadd.f32 %v2211_v6, %v2159_v55  ;;  %v2161_v10 = vadd.f32 %v2160_v21, %v3773_v23 }
 0x56e   : > { %v2164_v3 = vpop.f32.mrf.mxu0 }
 0x56f   : > { %2306 = vst [vmem:[%s3790_s0 + $0x88] sm:$0xff] %v2274_v5  ;;  %v2275_v8 = vmax.f32 %v2243_v44, 0.0  ;;  %v2244_v25 = vadd.f32 %v2212_v0, %v2161_v10  ;;  %v2165_v40 = vadd.f32 %v2164_v3, %v3770_v32 }
 0x570   : > { %v2166_v39 = vpop.f32.mrf.mxu0 }
 0x571   : > { %2307 = vst [vmem:[%s3790_s0 + $0x90] sm:$0xff] %v2275_v8  ;;  %v2276_v17 = vmax.f32 %v2244_v25, 0.0  ;;  %v2245_v13 = vadd.f32 %v2213_v36, %v2165_v40  ;;  %v2167_v45 = vadd.f32 %v2166_v39, %v3773_v23 }
 0x572   : > { %v2168_v47 = vpop.f32.mrf.mxu0 }
 0x573   : > { %2308 = vst [vmem:[%s3790_s0 + $0x98] sm:$0xff] %v2276_v17  ;;  %v2277_v49 = vmax.f32 %v2245_v13, 0.0  ;;  %v2246_v51 = vadd.f32 %v2214_v58, %v2167_v45  ;;  %v2169_v35 = vadd.f32 %v2168_v47, %v3770_v32 }
 0x574   : > { %v2170_v19 = vpop.f32.mrf.mxu0 }
 0x575   : > { %2309 = vst [vmem:[%s3790_s0 + $0xa0] sm:$0xff] %v2277_v49  ;;  %v2278_v57 = vmax.f32 %v2246_v51, 0.0  ;;  %v2247_v9 = vadd.f32 %v2215_v52, %v2169_v35  ;;  %v2171_v4 = vadd.f32 %v2170_v19, %v3773_v23 }
 0x577   : > { %2310 = vst [vmem:[%s3790_s0 + $0xa8] sm:$0xff] %v2278_v57  ;;  %v2279_v31 = vmax.f32 %v2247_v9, 0.0  ;;  %v2248_v41 = vadd.f32 %v2216_v63, %v2171_v4 }
 0x579   : > { %2311 = vst [vmem:[%s3790_s0 + $0xb0] sm:$0xff] %v2279_v31  ;;  %v2280_v32 = vmax.f32 %v2248_v41, 0.0 }
 0x57b   : > { %2312 = vst [vmem:[%s3790_s0 + $0xb8] sm:$0xff] %v2280_v32 }
 0x57c   : > { %3098 = shalt.err (!%p3095_p13)
}
 0x57d   : > { %s3099_s11 = scalar_lea.hbm %s3877_s17, 4096  ;;  %s3103_s26 = scalar_lea.hbm %s3932_s8, 8192 }
 0x57e   : > { %p3100_p6 = scmp.ne.s32.totalorder %s3877_s17, %s3099_s11  ;;  %p3104_p11 = scmp.lt.s32.totalorder %s3877_s17, %s3932_s8 }
 0x57f   : > { %p3105_p4 = scmp.lt.s32.totalorder %s3103_s26, %s3099_s11 }
 0x580   : > { %p3101_p1 = pnand %p3100_p6, %p3964_p5 }
 0x581   : > { %p3106_p12 = por %p3105_p4, %p3104_p11 }
 0x582   : > { %p3102_p8 = pneg %p3101_p1 }
 0x584   : > { %p3107_p0 = pnand %p3106_p12, %p3102_p8 }
 0x586   : > { %3110 = shalt.err (!%p3107_p0)
}
 0x587   : > { %s3174_s4 = smov 256   ;;  %s3175_s0 = smov 16  }
 0x588   : > { %2742 = dma.vmem_to_hbm [thread:$0]  (%p3964_p5), %s3879_s15, 4096, %s3877_s17, %s2322_s16, %s3174_s4, %s3174_s4, %s3175_s0  }
 0x589 PF: > { %s2350_s20 = sand.u32 1, %s3149_s27   ;;  %p3965_p3 = scmp.ne.s32.totalorder %s3944_s12, 0 }
 0x58a   : > { %p3966_p7 = scmp.ge.s32.totalorder %s3161_s30, 2  ;;  %s2351_s22 = scalar_lea.sflag [#allocation5], %s2350_s20 }
 0x58c   : > { %p2762_p9 = pnand %p3966_p7, %p3965_p3 }
 0x58e   : > { %p2763_p2 = pneg %p2762_p9 }
 0x590   : > { %3144 = dma.done.wait (%p2763_p2), %s2351_s22, 4096  }
 0x591   : > { %3146 = vsyncadd (%p2763_p2), %s2351_s22, 4294963200  ;;  %s3967_s14 = sld [smem:[#allocation18_spill]]  ;;  %p25_p10 = scmp.ge.s32.totalorder %s3301_s18, 4  }
 0x592   : > { %s3968_s27 = smov %s3153_s28  ;;  %s3969_s28 = smov %s3157_s29 }
 0x593   : > { %s3971_s30 = smov %s3301_s18  ;;  %27 = sbr.rel (!%p25_p10) target bundleno = 13 (0xd), region = 122 }
 0x597   : > { %s3970_s29 = smov %s3967_s14 }
 0x598   :  { %2356 = vsyncpa [#allocation4], 1 }
 0x599   :  { %2358 = vsyncpa [#allocation4 + $0x1], 1 }
 0x59a   :  { %2359 = vsyncpa [#allocation7], 1 }
 0x59b   :  { %2361 = vsyncpa [#allocation7 + $0x1], 1 }
 0x59c   :  { %2362 = vsyncpa [#allocation10], 1 }
 0x59d   :  { %2363 = vsyncpa [#allocation5], 1 }
 0x59e   :  { %2365 = vsyncpa [#allocation5 + $0x1], 1 }

</bundles_post_ra>
